<compile_context>
chip_gen: v7x
topology: tpu7x:2x2x1
jax: 0.10.0
libtpu: 0.0.40
codegen_flags: <defaults>
</compile_context>

<pallas_src>
import functools

import jax
import jax.numpy as jnp
from jax import lax
from jax.experimental import pallas as pl
from jax.experimental.pallas import tpu as pltpu

EPS = 1e-5  # PyTorch BatchNorm2d default


# ----------------------------- Pallas kernel ------------------------------ #

def _fill_padded(dst_ref, a, circular):
    """Write `a` (H, W, C) into VMEM scratch `dst_ref` (H+2, W+2, C):
    height is zero-padded; width is zero-padded or circularly wrapped."""
    H, W, _ = a.shape
    dst_ref[...] = jnp.zeros(dst_ref.shape, dst_ref.dtype)
    dst_ref[1:H + 1, 1:W + 1, :] = a
    if circular:
        dst_ref[1:H + 1, 0:1, :] = a[:, W - 1:W, :]          # left halo  = last col
        dst_ref[1:H + 1, W + 1:W + 2, :] = a[:, 0:1, :]      # right halo = first col


def _conv3x3_bn_relu(src_ref, w_ref, scale_ref, shift_ref, H, W):
    """3x3 conv over padded (H+2, W+2, Cin) scratch as 9 shifted MXU matmuls,
    then folded-BN affine + ReLU.  Returns (H*W, Cout) float32."""
    cin = src_ref.shape[-1]
    cout = w_ref.shape[-1]
    acc = jnp.zeros((H * W, cout), jnp.float32)
    for k in range(9):                        # static unroll: 9 taps
        dy, dx = divmod(k, 3)
        patch = src_ref[dy:dy + H, dx:dx + W, :].reshape(H * W, cin)
        acc = acc + jnp.dot(patch, w_ref[k],
                            preferred_element_type=jnp.float32)
    return jnp.maximum(acc * scale_ref[...] + shift_ref[...], 0.0)


def _down_kernel(x_ref, w1_ref, s1_ref, t1_ref, w2_ref, s2_ref, t2_ref,
                 o_ref, xpad_ref, hpad_ref, *, circular):
    H, W = o_ref.shape[1], o_ref.shape[2]
    cmid = w1_ref.shape[-1]
    cout = o_ref.shape[-1]

    # conv1 -> BN1 -> ReLU
    _fill_padded(xpad_ref, x_ref[0].astype(jnp.float32), circular)
    a1 = _conv3x3_bn_relu(xpad_ref, w1_ref, s1_ref, t1_ref, H, W)

    # conv2 -> BN2 -> ReLU  (intermediate stays in VMEM, no HBM round trip)
    _fill_padded(hpad_ref, a1.reshape(H, W, cmid), circular)
    a2 = _conv3x3_bn_relu(hpad_ref, w2_ref, s2_ref, t2_ref, H, W)

    o_ref[0] = a2.reshape(H, W, cout).astype(o_ref.dtype)


# ------------------------------- Wrapper ----------------------------------- #

def _fold_bn(conv_w, conv_b, gamma, beta, mean, var, eps=EPS):
    """Fold Conv2d bias + eval-mode BatchNorm into (w9, scale, shift).
    conv_w (Cout, Cin, 3, 3) -> (9, Cin, Cout) so each tap is a matmul RHS."""
    s = gamma * lax.rsqrt(var + eps)
    scale = s.reshape(1, -1).astype(jnp.float32)
    shift = (beta + s * (conv_b - mean)).reshape(1, -1).astype(jnp.float32)
    cout, cin = conv_w.shape[0], conv_w.shape[1]
    w9 = jnp.transpose(conv_w, (2, 3, 1, 0)).reshape(9, cin, cout).astype(jnp.float32)
    return w9, scale, shift


def down_forward(x_nchw, params, *, circular_padding=True):
    """Eval-mode forward of `down`.  x_nchw: (B, Cin, H, W) float32.
    Returns (B, Cout, H//2, W//2) in NCHW, matching the PyTorch module."""
    B, Cin, H, W = x_nchw.shape
    Hp, Wp = H // 2, W // 2

    # MaxPool2d(2) (floor) + single NCHW->NHWC transpose, on the 4x-reduced
    # tensor; these fuse under jit and feed the kernel its channels-last layout.
    xc = x_nchw[:, :, :Hp * 2, :Wp * 2]
    pooled = jnp.maximum(
        jnp.maximum(xc[:, :, 0::2, 0::2], xc[:, :, 0::2, 1::2]),
        jnp.maximum(xc[:, :, 1::2, 0::2], xc[:, :, 1::2, 1::2]))
    pooled = jnp.transpose(pooled, (0, 2, 3, 1))            # (B, Hp, Wp, Cin)

    w1, s1, t1 = _fold_bn(params["w1"], params["b1"], params["gamma1"],
                          params["beta1"], params["mean1"], params["var1"])
    w2, s2, t2 = _fold_bn(params["w2"], params["b2"], params["gamma2"],
                          params["beta2"], params["mean2"], params["var2"])
    Cmid, Cout = w1.shape[-1], w2.shape[-1]

    kernel = functools.partial(_down_kernel, circular=circular_padding)

    out_nhwc = pl.pallas_call(
        kernel,
        out_shape=jax.ShapeDtypeStruct((B, Hp, Wp, Cout), x_nchw.dtype),
        grid_spec=pltpu.PrefetchScalarGridSpec(
            num_scalar_prefetch=0,
            grid=(B,),
            in_specs=[
                pl.BlockSpec((1, Hp, Wp, Cin), lambda b: (b, 0, 0, 0)),
                pl.BlockSpec((9, Cin, Cmid), lambda b: (0, 0, 0)),   # resident
                pl.BlockSpec((1, Cmid), lambda b: (0, 0)),
                pl.BlockSpec((1, Cmid), lambda b: (0, 0)),
                pl.BlockSpec((9, Cmid, Cout), lambda b: (0, 0, 0)),  # resident
                pl.BlockSpec((1, Cout), lambda b: (0, 0)),
                pl.BlockSpec((1, Cout), lambda b: (0, 0)),
            ],
            out_specs=pl.BlockSpec((1, Hp, Wp, Cout), lambda b: (b, 0, 0, 0)),
            scratch_shapes=[
                pltpu.VMEM((Hp + 2, Wp + 2, Cin), jnp.float32),   # padded input
                pltpu.VMEM((Hp + 2, Wp + 2, Cmid), jnp.float32),  # padded conv1 act
            ],
        ),
        compiler_params=pltpu.CompilerParams(
            dimension_semantics=("parallel",)),
    )(pooled, w1, s1, t1, w2, s2, t2)

    # Only to match PyTorch's NCHW output; NHWC consumers should skip this.
    return jnp.transpose(out_nhwc, (0, 3, 1, 2))


# ------------------------------ Reference ---------------------------------- #

def _reference(x_nchw, params, circular_padding):
    """Pure-JAX mirror of the PyTorch forward (eval mode)."""
    y = lax.reduce_window(x_nchw, -jnp.inf, lax.max,
                          (1, 1, 2, 2), (1, 1, 2, 2), "VALID")

    def conv_bn_relu(y, w, b, gamma, beta, mean, var):
        if circular_padding:
            y = jnp.pad(y, ((0, 0), (0, 0), (0, 0), (1, 1)), mode="wrap")
            pad = ((1, 1), (0, 0))
        else:
            pad = ((1, 1), (1, 1))
        y = lax.conv_general_dilated(
            y, w, window_strides=(1, 1), padding=pad,
            dimension_numbers=("NCHW", "OIHW", "NCHW"),
            precision=lax.Precision.HIGHEST)
        y = y + b[None, :, None, None]
        y = (y - mean[None, :, None, None]) * lax.rsqrt(var[None, :, None, None] + EPS)
        y = gamma[None, :, None, None] * y + beta[None, :, None, None]
        return jnp.maximum(y, 0.0)

    y = conv_bn_relu(y, params["w1"], params["b1"], params["gamma1"],
                     params["beta1"], params["mean1"], params["var1"])
    y = conv_bn_relu(y, params["w2"], params["b2"], params["gamma2"],
                     params["beta2"], params["mean2"], params["var2"])
    return y


# --------------------------------- Main ------------------------------------ #

if __name__ == "__main__":
    B, in_ch, out_ch, H, W = 2, 4, 8, 16, 16

    key = jax.random.PRNGKey(0)
    k = jax.random.split(key, 13)
    x = jax.random.normal(k[0], (B, in_ch, H, W), dtype=jnp.float32)
    params = {
        "w1": jax.random.normal(k[1], (out_ch, in_ch, 3, 3), jnp.float32) * 0.2,
        "b1": jax.random.normal(k[2], (out_ch,), jnp.float32) * 0.1,
        "gamma1": 1.0 + 0.1 * jax.random.normal(k[3], (out_ch,), jnp.float32),
        "beta1": 0.1 * jax.random.normal(k[4], (out_ch,), jnp.float32),
        "mean1": 0.1 * jax.random.normal(k[5], (out_ch,), jnp.float32),
        "var1": jax.random.uniform(k[6], (out_ch,), jnp.float32, 0.5, 1.5),
        "w2": jax.random.normal(k[7], (out_ch, out_ch, 3, 3), jnp.float32) * 0.2,
        "b2": jax.random.normal(k[8], (out_ch,), jnp.float32) * 0.1,
        "gamma2": 1.0 + 0.1 * jax.random.normal(k[9], (out_ch,), jnp.float32),
        "beta2": 0.1 * jax.random.normal(k[10], (out_ch,), jnp.float32),
        "mean2": 0.1 * jax.random.normal(k[11], (out_ch,), jnp.float32),
        "var2": jax.random.uniform(k[12], (out_ch,), jnp.float32, 0.5, 1.5),
    }

    fwd = jax.jit(down_forward, static_argnames=("circular_padding",))

    for circ in (True, False):
        out = jax.block_until_ready(fwd(x, params, circular_padding=circ))
        ref = _reference(x, params, circ)
        assert out.shape == (B, out_ch, H // 2, W // 2), out.shape
        assert jnp.allclose(out, ref, atol=1e-3, rtol=1e-3), f"mismatch (circular={circ})"

    print("KERNEL_OK")
</pallas_src>

<mosaic_0001>
module attributes {stable_mosaic.version = 11 : i64} {
  func.func @_down_kernel(%arg0: i32, %arg1: memref<1x8x8x4xf32, #tpu.memory_space<vmem>>, %arg2: memref<9x4x8xf32, #tpu.memory_space<vmem>>, %arg3: memref<1x8xf32, #tpu.memory_space<vmem>>, %arg4: memref<1x8xf32, #tpu.memory_space<vmem>>, %arg5: memref<9x8x8xf32, #tpu.memory_space<vmem>>, %arg6: memref<1x8xf32, #tpu.memory_space<vmem>>, %arg7: memref<1x8xf32, #tpu.memory_space<vmem>>, %arg8: memref<1x8x8x8xf32, #tpu.memory_space<vmem>>, %arg9: memref<10x10x4xf32, #tpu.memory_space<vmem>>, %arg10: memref<10x10x8xf32, #tpu.memory_space<vmem>>) attributes {dimension_semantics = [#tpu.dimension_semantics<parallel>], iteration_bounds = array<i64: 2>, scalar_prefetch = 0 : i64, scratch_operands = 2 : i64, tpu.core_type = #tpu.core_type<tc>, window_params = [{transform_indices = @transform_0, window_bounds = array<i64: 1, 8, 8, 4>}, {pipeline_mode = #tpu.pipeline_mode<synchronous>, transform_indices = @transform_1, window_bounds = array<i64: 9, 4, 8>}, {pipeline_mode = #tpu.pipeline_mode<synchronous>, transform_indices = @transform_2, window_bounds = array<i64: 1, 8>}, {pipeline_mode = #tpu.pipeline_mode<synchronous>, transform_indices = @transform_3, window_bounds = array<i64: 1, 8>}, {pipeline_mode = #tpu.pipeline_mode<synchronous>, transform_indices = @transform_4, window_bounds = array<i64: 9, 8, 8>}, {pipeline_mode = #tpu.pipeline_mode<synchronous>, transform_indices = @transform_5, window_bounds = array<i64: 1, 8>}, {pipeline_mode = #tpu.pipeline_mode<synchronous>, transform_indices = @transform_6, window_bounds = array<i64: 1, 8>}, {transform_indices = @transform_7, window_bounds = array<i64: 1, 8, 8, 8>}]} {
    %c0 = arith.constant 0 : index
    %c0_0 = arith.constant 0 : index
    %c0_1 = arith.constant 0 : index
    %c0_2 = arith.constant 0 : index
    %0 = vector.load %arg1[%c0, %c0_0, %c0_1, %c0_2] : memref<1x8x8x4xf32, #tpu.memory_space<vmem>>, vector<1x8x8x4xf32>
    %1 = vector.shape_cast %0 : vector<1x8x8x4xf32> to vector<8x8x4xf32>
    %cst = arith.constant 0.000000e+00 : f32
    %2 = vector.broadcast %cst : f32 to vector<10x10x4xf32>
    %c0_3 = arith.constant 0 : index
    %c0_4 = arith.constant 0 : index
    %c0_5 = arith.constant 0 : index
    %3 = vector.load %arg9[%c0_3, %c0_4, %c0_5] : memref<10x10x4xf32, #tpu.memory_space<vmem>>, vector<10x10x4xf32>
    tpu.vector_store %arg9[%c0_3, %c0_4, %c0_5], %2 {strides = array<i32>} : memref<10x10x4xf32, #tpu.memory_space<vmem>>, vector<10x10x4xf32>,
    %c1 = arith.constant 1 : index
    %c1_6 = arith.constant 1 : index
    %c0_7 = arith.constant 0 : index
    %4 = vector.load %arg9[%c1, %c1_6, %c0_7] : memref<10x10x4xf32, #tpu.memory_space<vmem>>, vector<8x8x4xf32>
    tpu.vector_store %arg9[%c1, %c1_6, %c0_7], %1 {strides = array<i32>} : memref<10x10x4xf32, #tpu.memory_space<vmem>>, vector<8x8x4xf32>,
    %5 = vector.extract_strided_slice %1 {offsets = [0, 7, 0], sizes = [8, 1, 4], strides = [1, 1, 1]} : vector<8x8x4xf32> to vector<8x1x4xf32>
    %c1_8 = arith.constant 1 : index
    %c0_9 = arith.constant 0 : index
    %c0_10 = arith.constant 0 : index
    %6 = vector.load %arg9[%c1_8, %c0_9, %c0_10] : memref<10x10x4xf32, #tpu.memory_space<vmem>>, vector<8x1x4xf32>
    tpu.vector_store %arg9[%c1_8, %c0_9, %c0_10], %5 {strides = array<i32>} : memref<10x10x4xf32, #tpu.memory_space<vmem>>, vector<8x1x4xf32>,
    %7 = vector.extract_strided_slice %1 {offsets = [0, 0, 0], sizes = [8, 1, 4], strides = [1, 1, 1]} : vector<8x8x4xf32> to vector<8x1x4xf32>
    %c1_11 = arith.constant 1 : index
    %c9 = arith.constant 9 : index
    %c0_12 = arith.constant 0 : index
    %8 = vector.load %arg9[%c1_11, %c9, %c0_12] : memref<10x10x4xf32, #tpu.memory_space<vmem>>, vector<8x1x4xf32>
    tpu.vector_store %arg9[%c1_11, %c9, %c0_12], %7 {strides = array<i32>} : memref<10x10x4xf32, #tpu.memory_space<vmem>>, vector<8x1x4xf32>,
    %cst_13 = arith.constant 0.000000e+00 : f32
    %9 = vector.broadcast %cst_13 : f32 to vector<64x8xf32>
    %c0_14 = arith.constant 0 : index
    %c0_15 = arith.constant 0 : index
    %c0_16 = arith.constant 0 : index
    %10 = vector.load %arg9[%c0_14, %c0_15, %c0_16] : memref<10x10x4xf32, #tpu.memory_space<vmem>>, vector<8x8x4xf32>
    %11 = vector.shape_cast %10 : vector<8x8x4xf32> to vector<64x4xf32>
    %c0_17 = arith.constant 0 : index
    %c0_18 = arith.constant 0 : index
    %c0_19 = arith.constant 0 : index
    %12 = vector.load %arg2[%c0_17, %c0_18, %c0_19] : memref<9x4x8xf32, #tpu.memory_space<vmem>>, vector<1x4x8xf32>
    %13 = vector.shape_cast %12 : vector<1x4x8xf32> to vector<4x8xf32>
    %cst_20 = arith.constant dense<0.000000e+00> : vector<64x8xf32>
    %14 = tpu.matmul %11, %13, %cst_20 {dimension_numbers = #tpu.dot_dimension_numbers<[1], [0], [0], [1], [0, 0, 1, 1], [], []>} : vector<64x4xf32>, vector<4x8xf32>, vector<64x8xf32> -> vector<64x8xf32>
    %15 = arith.addf %9, %14 : vector<64x8xf32>
    %c0_21 = arith.constant 0 : index
    %c1_22 = arith.constant 1 : index
    %c0_23 = arith.constant 0 : index
    %16 = vector.load %arg9[%c0_21, %c1_22, %c0_23] : memref<10x10x4xf32, #tpu.memory_space<vmem>>, vector<8x8x4xf32>
    %17 = vector.shape_cast %16 : vector<8x8x4xf32> to vector<64x4xf32>
    %c1_24 = arith.constant 1 : index
    %c0_25 = arith.constant 0 : index
    %c0_26 = arith.constant 0 : index
    %18 = vector.load %arg2[%c1_24, %c0_25, %c0_26] : memref<9x4x8xf32, #tpu.memory_space<vmem>>, vector<1x4x8xf32>
    %19 = vector.shape_cast %18 : vector<1x4x8xf32> to vector<4x8xf32>
    %cst_27 = arith.constant dense<0.000000e+00> : vector<64x8xf32>
    %20 = tpu.matmul %17, %19, %cst_27 {dimension_numbers = #tpu.dot_dimension_numbers<[1], [0], [0], [1], [0, 0, 1, 1], [], []>} : vector<64x4xf32>, vector<4x8xf32>, vector<64x8xf32> -> vector<64x8xf32>
    %21 = arith.addf %15, %20 : vector<64x8xf32>
    %c0_28 = arith.constant 0 : index
    %c2 = arith.constant 2 : index
    %c0_29 = arith.constant 0 : index
    %22 = vector.load %arg9[%c0_28, %c2, %c0_29] : memref<10x10x4xf32, #tpu.memory_space<vmem>>, vector<8x8x4xf32>
    %23 = vector.shape_cast %22 : vector<8x8x4xf32> to vector<64x4xf32>
    %c2_30 = arith.constant 2 : index
    %c0_31 = arith.constant 0 : index
    %c0_32 = arith.constant 0 : index
    %24 = vector.load %arg2[%c2_30, %c0_31, %c0_32] : memref<9x4x8xf32, #tpu.memory_space<vmem>>, vector<1x4x8xf32>
    %25 = vector.shape_cast %24 : vector<1x4x8xf32> to vector<4x8xf32>
    %cst_33 = arith.constant dense<0.000000e+00> : vector<64x8xf32>
    %26 = tpu.matmul %23, %25, %cst_33 {dimension_numbers = #tpu.dot_dimension_numbers<[1], [0], [0], [1], [0, 0, 1, 1], [], []>} : vector<64x4xf32>, vector<4x8xf32>, vector<64x8xf32> -> vector<64x8xf32>
    %27 = arith.addf %21, %26 : vector<64x8xf32>
    %c1_34 = arith.constant 1 : index
    %c0_35 = arith.constant 0 : index
    %c0_36 = arith.constant 0 : index
    %28 = vector.load %arg9[%c1_34, %c0_35, %c0_36] : memref<10x10x4xf32, #tpu.memory_space<vmem>>, vector<8x8x4xf32>
    %29 = vector.shape_cast %28 : vector<8x8x4xf32> to vector<64x4xf32>
    %c3 = arith.constant 3 : index
    %c0_37 = arith.constant 0 : index
    %c0_38 = arith.constant 0 : index
    %30 = vector.load %arg2[%c3, %c0_37, %c0_38] : memref<9x4x8xf32, #tpu.memory_space<vmem>>, vector<1x4x8xf32>
    %31 = vector.shape_cast %30 : vector<1x4x8xf32> to vector<4x8xf32>
    %cst_39 = arith.constant dense<0.000000e+00> : vector<64x8xf32>
    %32 = tpu.matmul %29, %31, %cst_39 {dimension_numbers = #tpu.dot_dimension_numbers<[1], [0], [0], [1], [0, 0, 1, 1], [], []>} : vector<64x4xf32>, vector<4x8xf32>, vector<64x8xf32> -> vector<64x8xf32>
    %33 = arith.addf %27, %32 : vector<64x8xf32>
    %c1_40 = arith.constant 1 : index
    %c1_41 = arith.constant 1 : index
    %c0_42 = arith.constant 0 : index
    %34 = vector.load %arg9[%c1_40, %c1_41, %c0_42] : memref<10x10x4xf32, #tpu.memory_space<vmem>>, vector<8x8x4xf32>
    %35 = vector.shape_cast %34 : vector<8x8x4xf32> to vector<64x4xf32>
    %c4 = arith.constant 4 : index
    %c0_43 = arith.constant 0 : index
    %c0_44 = arith.constant 0 : index
    %36 = vector.load %arg2[%c4, %c0_43, %c0_44] : memref<9x4x8xf32, #tpu.memory_space<vmem>>, vector<1x4x8xf32>
    %37 = vector.shape_cast %36 : vector<1x4x8xf32> to vector<4x8xf32>
    %cst_45 = arith.constant dense<0.000000e+00> : vector<64x8xf32>
    %38 = tpu.matmul %35, %37, %cst_45 {dimension_numbers = #tpu.dot_dimension_numbers<[1], [0], [0], [1], [0, 0, 1, 1], [], []>} : vector<64x4xf32>, vector<4x8xf32>, vector<64x8xf32> -> vector<64x8xf32>
    %39 = arith.addf %33, %38 : vector<64x8xf32>
    %c1_46 = arith.constant 1 : index
    %c2_47 = arith.constant 2 : index
    %c0_48 = arith.constant 0 : index
    %40 = vector.load %arg9[%c1_46, %c2_47, %c0_48] : memref<10x10x4xf32, #tpu.memory_space<vmem>>, vector<8x8x4xf32>
    %41 = vector.shape_cast %40 : vector<8x8x4xf32> to vector<64x4xf32>
    %c5 = arith.constant 5 : index
    %c0_49 = arith.constant 0 : index
    %c0_50 = arith.constant 0 : index
    %42 = vector.load %arg2[%c5, %c0_49, %c0_50] : memref<9x4x8xf32, #tpu.memory_space<vmem>>, vector<1x4x8xf32>
    %43 = vector.shape_cast %42 : vector<1x4x8xf32> to vector<4x8xf32>
    %cst_51 = arith.constant dense<0.000000e+00> : vector<64x8xf32>
    %44 = tpu.matmul %41, %43, %cst_51 {dimension_numbers = #tpu.dot_dimension_numbers<[1], [0], [0], [1], [0, 0, 1, 1], [], []>} : vector<64x4xf32>, vector<4x8xf32>, vector<64x8xf32> -> vector<64x8xf32>
    %45 = arith.addf %39, %44 : vector<64x8xf32>
    %c2_52 = arith.constant 2 : index
    %c0_53 = arith.constant 0 : index
    %c0_54 = arith.constant 0 : index
    %46 = vector.load %arg9[%c2_52, %c0_53, %c0_54] : memref<10x10x4xf32, #tpu.memory_space<vmem>>, vector<8x8x4xf32>
    %47 = vector.shape_cast %46 : vector<8x8x4xf32> to vector<64x4xf32>
    %c6 = arith.constant 6 : index
    %c0_55 = arith.constant 0 : index
    %c0_56 = arith.constant 0 : index
    %48 = vector.load %arg2[%c6, %c0_55, %c0_56] : memref<9x4x8xf32, #tpu.memory_space<vmem>>, vector<1x4x8xf32>
    %49 = vector.shape_cast %48 : vector<1x4x8xf32> to vector<4x8xf32>
    %cst_57 = arith.constant dense<0.000000e+00> : vector<64x8xf32>
    %50 = tpu.matmul %47, %49, %cst_57 {dimension_numbers = #tpu.dot_dimension_numbers<[1], [0], [0], [1], [0, 0, 1, 1], [], []>} : vector<64x4xf32>, vector<4x8xf32>, vector<64x8xf32> -> vector<64x8xf32>
    %51 = arith.addf %45, %50 : vector<64x8xf32>
    %c2_58 = arith.constant 2 : index
    %c1_59 = arith.constant 1 : index
    %c0_60 = arith.constant 0 : index
    %52 = vector.load %arg9[%c2_58, %c1_59, %c0_60] : memref<10x10x4xf32, #tpu.memory_space<vmem>>, vector<8x8x4xf32>
    %53 = vector.shape_cast %52 : vector<8x8x4xf32> to vector<64x4xf32>
    %c7 = arith.constant 7 : index
    %c0_61 = arith.constant 0 : index
    %c0_62 = arith.constant 0 : index
    %54 = vector.load %arg2[%c7, %c0_61, %c0_62] : memref<9x4x8xf32, #tpu.memory_space<vmem>>, vector<1x4x8xf32>
    %55 = vector.shape_cast %54 : vector<1x4x8xf32> to vector<4x8xf32>
    %cst_63 = arith.constant dense<0.000000e+00> : vector<64x8xf32>
    %56 = tpu.matmul %53, %55, %cst_63 {dimension_numbers = #tpu.dot_dimension_numbers<[1], [0], [0], [1], [0, 0, 1, 1], [], []>} : vector<64x4xf32>, vector<4x8xf32>, vector<64x8xf32> -> vector<64x8xf32>
    %57 = arith.addf %51, %56 : vector<64x8xf32>
    %c2_64 = arith.constant 2 : index
    %c2_65 = arith.constant 2 : index
    %c0_66 = arith.constant 0 : index
    %58 = vector.load %arg9[%c2_64, %c2_65, %c0_66] : memref<10x10x4xf32, #tpu.memory_space<vmem>>, vector<8x8x4xf32>
    %59 = vector.shape_cast %58 : vector<8x8x4xf32> to vector<64x4xf32>
    %c8 = arith.constant 8 : index
    %c0_67 = arith.constant 0 : index
    %c0_68 = arith.constant 0 : index
    %60 = vector.load %arg2[%c8, %c0_67, %c0_68] : memref<9x4x8xf32, #tpu.memory_space<vmem>>, vector<1x4x8xf32>
    %61 = vector.shape_cast %60 : vector<1x4x8xf32> to vector<4x8xf32>
    %cst_69 = arith.constant dense<0.000000e+00> : vector<64x8xf32>
    %62 = tpu.matmul %59, %61, %cst_69 {dimension_numbers = #tpu.dot_dimension_numbers<[1], [0], [0], [1], [0, 0, 1, 1], [], []>} : vector<64x4xf32>, vector<4x8xf32>, vector<64x8xf32> -> vector<64x8xf32>
    %63 = arith.addf %57, %62 : vector<64x8xf32>
    %c0_70 = arith.constant 0 : index
    %c0_71 = arith.constant 0 : index
    %64 = vector.load %arg3[%c0_70, %c0_71] : memref<1x8xf32, #tpu.memory_space<vmem>>, vector<1x8xf32>
    %65 = vector.broadcast %64 : vector<1x8xf32> to vector<64x8xf32>
    %66 = arith.mulf %63, %65 : vector<64x8xf32>
    %c0_72 = arith.constant 0 : index
    %c0_73 = arith.constant 0 : index
    %67 = vector.load %arg4[%c0_72, %c0_73] : memref<1x8xf32, #tpu.memory_space<vmem>>, vector<1x8xf32>
    %68 = vector.broadcast %67 : vector<1x8xf32> to vector<64x8xf32>
    %69 = arith.addf %66, %68 : vector<64x8xf32>
    %cst_74 = arith.constant 0.000000e+00 : f32
    %70 = vector.broadcast %cst_74 : f32 to vector<64x8xf32>
    %71 = arith.maximumf %69, %70 : vector<64x8xf32>
    %72 = vector.shape_cast %71 : vector<64x8xf32> to vector<8x8x8xf32>
    %cst_75 = arith.constant 0.000000e+00 : f32
    %73 = vector.broadcast %cst_75 : f32 to vector<10x10x8xf32>
    %c0_76 = arith.constant 0 : index
    %c0_77 = arith.constant 0 : index
    %c0_78 = arith.constant 0 : index
    %74 = vector.load %arg10[%c0_76, %c0_77, %c0_78] : memref<10x10x8xf32, #tpu.memory_space<vmem>>, vector<10x10x8xf32>
    tpu.vector_store %arg10[%c0_76, %c0_77, %c0_78], %73 {strides = array<i32>} : memref<10x10x8xf32, #tpu.memory_space<vmem>>, vector<10x10x8xf32>,
    %c1_79 = arith.constant 1 : index
    %c1_80 = arith.constant 1 : index
    %c0_81 = arith.constant 0 : index
    %75 = vector.load %arg10[%c1_79, %c1_80, %c0_81] : memref<10x10x8xf32, #tpu.memory_space<vmem>>, vector<8x8x8xf32>
    tpu.vector_store %arg10[%c1_79, %c1_80, %c0_81], %72 {strides = array<i32>} : memref<10x10x8xf32, #tpu.memory_space<vmem>>, vector<8x8x8xf32>,
    %76 = vector.extract_strided_slice %72 {offsets = [0, 7, 0], sizes = [8, 1, 8], strides = [1, 1, 1]} : vector<8x8x8xf32> to vector<8x1x8xf32>
    %c1_82 = arith.constant 1 : index
    %c0_83 = arith.constant 0 : index
    %c0_84 = arith.constant 0 : index
    %77 = vector.load %arg10[%c1_82, %c0_83, %c0_84] : memref<10x10x8xf32, #tpu.memory_space<vmem>>, vector<8x1x8xf32>
    tpu.vector_store %arg10[%c1_82, %c0_83, %c0_84], %76 {strides = array<i32>} : memref<10x10x8xf32, #tpu.memory_space<vmem>>, vector<8x1x8xf32>,
    %78 = vector.extract_strided_slice %72 {offsets = [0, 0, 0], sizes = [8, 1, 8], strides = [1, 1, 1]} : vector<8x8x8xf32> to vector<8x1x8xf32>
    %c1_85 = arith.constant 1 : index
    %c9_86 = arith.constant 9 : index
    %c0_87 = arith.constant 0 : index
    %79 = vector.load %arg10[%c1_85, %c9_86, %c0_87] : memref<10x10x8xf32, #tpu.memory_space<vmem>>, vector<8x1x8xf32>
    tpu.vector_store %arg10[%c1_85, %c9_86, %c0_87], %78 {strides = array<i32>} : memref<10x10x8xf32, #tpu.memory_space<vmem>>, vector<8x1x8xf32>,
    %cst_88 = arith.constant 0.000000e+00 : f32
    %80 = vector.broadcast %cst_88 : f32 to vector<64x8xf32>
    %c0_89 = arith.constant 0 : index
    %c0_90 = arith.constant 0 : index
    %c0_91 = arith.constant 0 : index
    %81 = vector.load %arg10[%c0_89, %c0_90, %c0_91] : memref<10x10x8xf32, #tpu.memory_space<vmem>>, vector<8x8x8xf32>
    %82 = vector.shape_cast %81 : vector<8x8x8xf32> to vector<64x8xf32>
    %c0_92 = arith.constant 0 : index
    %c0_93 = arith.constant 0 : index
    %c0_94 = arith.constant 0 : index
    %83 = vector.load %arg5[%c0_92, %c0_93, %c0_94] : memref<9x8x8xf32, #tpu.memory_space<vmem>>, vector<1x8x8xf32>
    %84 = vector.shape_cast %83 : vector<1x8x8xf32> to vector<8x8xf32>
    %cst_95 = arith.constant dense<0.000000e+00> : vector<64x8xf32>
    %85 = tpu.matmul %82, %84, %cst_95 {dimension_numbers = #tpu.dot_dimension_numbers<[1], [0], [0], [1], [0, 0, 1, 1], [], []>} : vector<64x8xf32>, vector<8x8xf32>, vector<64x8xf32> -> vector<64x8xf32>
    %86 = arith.addf %80, %85 : vector<64x8xf32>
    %c0_96 = arith.constant 0 : index
    %c1_97 = arith.constant 1 : index
    %c0_98 = arith.constant 0 : index
    %87 = vector.load %arg10[%c0_96, %c1_97, %c0_98] : memref<10x10x8xf32, #tpu.memory_space<vmem>>, vector<8x8x8xf32>
    %88 = vector.shape_cast %87 : vector<8x8x8xf32> to vector<64x8xf32>
    %c1_99 = arith.constant 1 : index
    %c0_100 = arith.constant 0 : index
    %c0_101 = arith.constant 0 : index
    %89 = vector.load %arg5[%c1_99, %c0_100, %c0_101] : memref<9x8x8xf32, #tpu.memory_space<vmem>>, vector<1x8x8xf32>
    %90 = vector.shape_cast %89 : vector<1x8x8xf32> to vector<8x8xf32>
    %cst_102 = arith.constant dense<0.000000e+00> : vector<64x8xf32>
    %91 = tpu.matmul %88, %90, %cst_102 {dimension_numbers = #tpu.dot_dimension_numbers<[1], [0], [0], [1], [0, 0, 1, 1], [], []>} : vector<64x8xf32>, vector<8x8xf32>, vector<64x8xf32> -> vector<64x8xf32>
    %92 = arith.addf %86, %91 : vector<64x8xf32>
    %c0_103 = arith.constant 0 : index
    %c2_104 = arith.constant 2 : index
    %c0_105 = arith.constant 0 : index
    %93 = vector.load %arg10[%c0_103, %c2_104, %c0_105] : memref<10x10x8xf32, #tpu.memory_space<vmem>>, vector<8x8x8xf32>
    %94 = vector.shape_cast %93 : vector<8x8x8xf32> to vector<64x8xf32>
    %c2_106 = arith.constant 2 : index
    %c0_107 = arith.constant 0 : index
    %c0_108 = arith.constant 0 : index
    %95 = vector.load %arg5[%c2_106, %c0_107, %c0_108] : memref<9x8x8xf32, #tpu.memory_space<vmem>>, vector<1x8x8xf32>
    %96 = vector.shape_cast %95 : vector<1x8x8xf32> to vector<8x8xf32>
    %cst_109 = arith.constant dense<0.000000e+00> : vector<64x8xf32>
    %97 = tpu.matmul %94, %96, %cst_109 {dimension_numbers = #tpu.dot_dimension_numbers<[1], [0], [0], [1], [0, 0, 1, 1], [], []>} : vector<64x8xf32>, vector<8x8xf32>, vector<64x8xf32> -> vector<64x8xf32>
    %98 = arith.addf %92, %97 : vector<64x8xf32>
    %c1_110 = arith.constant 1 : index
    %c0_111 = arith.constant 0 : index
    %c0_112 = arith.constant 0 : index
    %99 = vector.load %arg10[%c1_110, %c0_111, %c0_112] : memref<10x10x8xf32, #tpu.memory_space<vmem>>, vector<8x8x8xf32>
    %100 = vector.shape_cast %99 : vector<8x8x8xf32> to vector<64x8xf32>
    %c3_113 = arith.constant 3 : index
    %c0_114 = arith.constant 0 : index
    %c0_115 = arith.constant 0 : index
    %101 = vector.load %arg5[%c3_113, %c0_114, %c0_115] : memref<9x8x8xf32, #tpu.memory_space<vmem>>, vector<1x8x8xf32>
    %102 = vector.shape_cast %101 : vector<1x8x8xf32> to vector<8x8xf32>
    %cst_116 = arith.constant dense<0.000000e+00> : vector<64x8xf32>
    %103 = tpu.matmul %100, %102, %cst_116 {dimension_numbers = #tpu.dot_dimension_numbers<[1], [0], [0], [1], [0, 0, 1, 1], [], []>} : vector<64x8xf32>, vector<8x8xf32>, vector<64x8xf32> -> vector<64x8xf32>
    %104 = arith.addf %98, %103 : vector<64x8xf32>
    %c1_117 = arith.constant 1 : index
    %c1_118 = arith.constant 1 : index
    %c0_119 = arith.constant 0 : index
    %105 = vector.load %arg10[%c1_117, %c1_118, %c0_119] : memref<10x10x8xf32, #tpu.memory_space<vmem>>, vector<8x8x8xf32>
    %106 = vector.shape_cast %105 : vector<8x8x8xf32> to vector<64x8xf32>
    %c4_120 = arith.constant 4 : index
    %c0_121 = arith.constant 0 : index
    %c0_122 = arith.constant 0 : index
    %107 = vector.load %arg5[%c4_120, %c0_121, %c0_122] : memref<9x8x8xf32, #tpu.memory_space<vmem>>, vector<1x8x8xf32>
    %108 = vector.shape_cast %107 : vector<1x8x8xf32> to vector<8x8xf32>
    %cst_123 = arith.constant dense<0.000000e+00> : vector<64x8xf32>
    %109 = tpu.matmul %106, %108, %cst_123 {dimension_numbers = #tpu.dot_dimension_numbers<[1], [0], [0], [1], [0, 0, 1, 1], [], []>} : vector<64x8xf32>, vector<8x8xf32>, vector<64x8xf32> -> vector<64x8xf32>
    %110 = arith.addf %104, %109 : vector<64x8xf32>
    %c1_124 = arith.constant 1 : index
    %c2_125 = arith.constant 2 : index
    %c0_126 = arith.constant 0 : index
    %111 = vector.load %arg10[%c1_124, %c2_125, %c0_126] : memref<10x10x8xf32, #tpu.memory_space<vmem>>, vector<8x8x8xf32>
    %112 = vector.shape_cast %111 : vector<8x8x8xf32> to vector<64x8xf32>
    %c5_127 = arith.constant 5 : index
    %c0_128 = arith.constant 0 : index
    %c0_129 = arith.constant 0 : index
    %113 = vector.load %arg5[%c5_127, %c0_128, %c0_129] : memref<9x8x8xf32, #tpu.memory_space<vmem>>, vector<1x8x8xf32>
    %114 = vector.shape_cast %113 : vector<1x8x8xf32> to vector<8x8xf32>
    %cst_130 = arith.constant dense<0.000000e+00> : vector<64x8xf32>
    %115 = tpu.matmul %112, %114, %cst_130 {dimension_numbers = #tpu.dot_dimension_numbers<[1], [0], [0], [1], [0, 0, 1, 1], [], []>} : vector<64x8xf32>, vector<8x8xf32>, vector<64x8xf32> -> vector<64x8xf32>
    %116 = arith.addf %110, %115 : vector<64x8xf32>
    %c2_131 = arith.constant 2 : index
    %c0_132 = arith.constant 0 : index
    %c0_133 = arith.constant 0 : index
    %117 = vector.load %arg10[%c2_131, %c0_132, %c0_133] : memref<10x10x8xf32, #tpu.memory_space<vmem>>, vector<8x8x8xf32>
    %118 = vector.shape_cast %117 : vector<8x8x8xf32> to vector<64x8xf32>
    %c6_134 = arith.constant 6 : index
    %c0_135 = arith.constant 0 : index
    %c0_136 = arith.constant 0 : index
    %119 = vector.load %arg5[%c6_134, %c0_135, %c0_136] : memref<9x8x8xf32, #tpu.memory_space<vmem>>, vector<1x8x8xf32>
    %120 = vector.shape_cast %119 : vector<1x8x8xf32> to vector<8x8xf32>
    %cst_137 = arith.constant dense<0.000000e+00> : vector<64x8xf32>
    %121 = tpu.matmul %118, %120, %cst_137 {dimension_numbers = #tpu.dot_dimension_numbers<[1], [0], [0], [1], [0, 0, 1, 1], [], []>} : vector<64x8xf32>, vector<8x8xf32>, vector<64x8xf32> -> vector<64x8xf32>
    %122 = arith.addf %116, %121 : vector<64x8xf32>
    %c2_138 = arith.constant 2 : index
    %c1_139 = arith.constant 1 : index
    %c0_140 = arith.constant 0 : index
    %123 = vector.load %arg10[%c2_138, %c1_139, %c0_140] : memref<10x10x8xf32, #tpu.memory_space<vmem>>, vector<8x8x8xf32>
    %124 = vector.shape_cast %123 : vector<8x8x8xf32> to vector<64x8xf32>
    %c7_141 = arith.constant 7 : index
    %c0_142 = arith.constant 0 : index
    %c0_143 = arith.constant 0 : index
    %125 = vector.load %arg5[%c7_141, %c0_142, %c0_143] : memref<9x8x8xf32, #tpu.memory_space<vmem>>, vector<1x8x8xf32>
    %126 = vector.shape_cast %125 : vector<1x8x8xf32> to vector<8x8xf32>
    %cst_144 = arith.constant dense<0.000000e+00> : vector<64x8xf32>
    %127 = tpu.matmul %124, %126, %cst_144 {dimension_numbers = #tpu.dot_dimension_numbers<[1], [0], [0], [1], [0, 0, 1, 1], [], []>} : vector<64x8xf32>, vector<8x8xf32>, vector<64x8xf32> -> vector<64x8xf32>
    %128 = arith.addf %122, %127 : vector<64x8xf32>
    %c2_145 = arith.constant 2 : index
    %c2_146 = arith.constant 2 : index
    %c0_147 = arith.constant 0 : index
    %129 = vector.load %arg10[%c2_145, %c2_146, %c0_147] : memref<10x10x8xf32, #tpu.memory_space<vmem>>, vector<8x8x8xf32>
    %130 = vector.shape_cast %129 : vector<8x8x8xf32> to vector<64x8xf32>
    %c8_148 = arith.constant 8 : index
    %c0_149 = arith.constant 0 : index
    %c0_150 = arith.constant 0 : index
    %131 = vector.load %arg5[%c8_148, %c0_149, %c0_150] : memref<9x8x8xf32, #tpu.memory_space<vmem>>, vector<1x8x8xf32>
    %132 = vector.shape_cast %131 : vector<1x8x8xf32> to vector<8x8xf32>
    %cst_151 = arith.constant dense<0.000000e+00> : vector<64x8xf32>
    %133 = tpu.matmul %130, %132, %cst_151 {dimension_numbers = #tpu.dot_dimension_numbers<[1], [0], [0], [1], [0, 0, 1, 1], [], []>} : vector<64x8xf32>, vector<8x8xf32>, vector<64x8xf32> -> vector<64x8xf32>
    %134 = arith.addf %128, %133 : vector<64x8xf32>
    %c0_152 = arith.constant 0 : index
    %c0_153 = arith.constant 0 : index
    %135 = vector.load %arg6[%c0_152, %c0_153] : memref<1x8xf32, #tpu.memory_space<vmem>>, vector<1x8xf32>
    %136 = vector.broadcast %135 : vector<1x8xf32> to vector<64x8xf32>
    %137 = arith.mulf %134, %136 : vector<64x8xf32>
    %c0_154 = arith.constant 0 : index
    %c0_155 = arith.constant 0 : index
    %138 = vector.load %arg7[%c0_154, %c0_155] : memref<1x8xf32, #tpu.memory_space<vmem>>, vector<1x8xf32>
    %139 = vector.broadcast %138 : vector<1x8xf32> to vector<64x8xf32>
    %140 = arith.addf %137, %139 : vector<64x8xf32>
    %cst_156 = arith.constant 0.000000e+00 : f32
    %141 = vector.broadcast %cst_156 : f32 to vector<64x8xf32>
    %142 = arith.maximumf %140, %141 : vector<64x8xf32>
    %143 = vector.shape_cast %142 : vector<64x8xf32> to vector<8x8x8xf32>
    %c0_157 = arith.constant 0 : index
    %c0_158 = arith.constant 0 : index
    %c0_159 = arith.constant 0 : index
    %c0_160 = arith.constant 0 : index
    %144 = vector.load %arg8[%c0_157, %c0_158, %c0_159, %c0_160] : memref<1x8x8x8xf32, #tpu.memory_space<vmem>>, vector<1x8x8x8xf32>
    %145 = vector.shape_cast %144 : vector<1x8x8x8xf32> to vector<8x8x8xf32>
    %146 = vector.shape_cast %143 : vector<8x8x8xf32> to vector<1x8x8x8xf32>
    tpu.vector_store %arg8[%c0_157, %c0_158, %c0_159, %c0_160], %146 {strides = array<i32>} : memref<1x8x8x8xf32, #tpu.memory_space<vmem>>, vector<1x8x8x8xf32>,
    return
  }
  func.func @transform_0(%arg0: i32) -> (i32, i32, i32, i32) {
    %c0_i32 = arith.constant 0 : i32
    %c0_i32_0 = arith.constant 0 : i32
    %c0_i32_1 = arith.constant 0 : i32
    %c0_i32_2 = arith.constant 0 : i32
    return %arg0, %c0_i32, %c0_i32_0, %c0_i32_1 : i32, i32, i32, i32
  }
  func.func @transform_1(%arg0: i32) -> (i32, i32, i32) {
    %c0_i32 = arith.constant 0 : i32
    %c0_i32_0 = arith.constant 0 : i32
    %c0_i32_1 = arith.constant 0 : i32
    %c0_i32_2 = arith.constant 0 : i32
    return %c0_i32, %c0_i32_0, %c0_i32_1 : i32, i32, i32
  }
  func.func @transform_2(%arg0: i32) -> (i32, i32) {
    %c0_i32 = arith.constant 0 : i32
    %c0_i32_0 = arith.constant 0 : i32
    %c0_i32_1 = arith.constant 0 : i32
    return %c0_i32, %c0_i32_0 : i32, i32
  }
  func.func @transform_3(%arg0: i32) -> (i32, i32) {
    %c0_i32 = arith.constant 0 : i32
    %c0_i32_0 = arith.constant 0 : i32
    %c0_i32_1 = arith.constant 0 : i32
    return %c0_i32, %c0_i32_0 : i32, i32
  }
  func.func @transform_4(%arg0: i32) -> (i32, i32, i32) {
    %c0_i32 = arith.constant 0 : i32
    %c0_i32_0 = arith.constant 0 : i32
    %c0_i32_1 = arith.constant 0 : i32
    %c0_i32_2 = arith.constant 0 : i32
    return %c0_i32, %c0_i32_0, %c0_i32_1 : i32, i32, i32
  }
  func.func @transform_5(%arg0: i32) -> (i32, i32) {
    %c0_i32 = arith.constant 0 : i32
    %c0_i32_0 = arith.constant 0 : i32
    %c0_i32_1 = arith.constant 0 : i32
    return %c0_i32, %c0_i32_0 : i32, i32
  }
  func.func @transform_6(%arg0: i32) -> (i32, i32) {
    %c0_i32 = arith.constant 0 : i32
    %c0_i32_0 = arith.constant 0 : i32
    %c0_i32_1 = arith.constant 0 : i32
    return %c0_i32, %c0_i32_0 : i32, i32
  }
  func.func @transform_7(%arg0: i32) -> (i32, i32, i32, i32) {
    %c0_i32 = arith.constant 0 : i32
    %c0_i32_0 = arith.constant 0 : i32
    %c0_i32_1 = arith.constant 0 : i32
    %c0_i32_2 = arith.constant 0 : i32
    return %arg0, %c0_i32, %c0_i32_0, %c0_i32_1 : i32, i32, i32, i32
  }
}

</mosaic_0001>

<bundles_post_ra>
// kernel: down_forward.1
= control target key start
LH: loop header
LB: loop body
LE: loop exit
PB: predicated region body
PF: predicated region fallthrough
CT: control target
= control target key end

     0   :  { %s3952_s24 = smov 0   ;;  %s4552_s0 = inlined_call_operand.vmem [shape: f32[2,8,8,4], index: 0, kind: input, shape index: {}]   ;;  %s4553_s1 = inlined_call_operand.vmem [shape: f32[9,4,8], index: 1, kind: input, shape index: {}]   ;;  %s4554_s2 = inlined_call_operand.vmem [shape: f32[1,8], index: 2, kind: input, shape index: {}]   ;;  %s4555_s3 = inlined_call_operand.vmem [shape: f32[1,8], index: 3, kind: input, shape index: {}]   ;;  %s4556_s4 = inlined_call_operand.vmem [shape: f32[9,8,8], index: 4, kind: input, shape index: {}]   ;;  %s4557_s5 = inlined_call_operand.vmem [shape: f32[1,8], index: 5, kind: input, shape index: {}]   ;;  %s4558_s6 = inlined_call_operand.vmem [shape: f32[1,8], index: 6, kind: input, shape index: {}]   ;;  %s4559_s7 = inlined_call_operand.vmem [shape: f32[2,8,8,8], index: 7, kind: output, shape index: {}]  }
   0x1 LB: > { %s3166_s25 = sadd.s32 4294967295, %s3909_s24   ;;  %p3170_p0 = scmp.ge.s32.totalorder %s3909_s24, 1  ;;  %s3909_s24 = sphi %s3952_s24, %s17_s24  }
   0x2   : > { %p237_p1 = scmp.lt.s32.totalorder %s3909_s24, 3 }
   0x4   : > { %p238_p2 = pnand %p3170_p0, %p237_p1 }
   0x5   : > { %v3175_v0 = vld [vmem:[%s4553_s1 + $0x4] sm:$0xf] (!%p238_p2)  ;;  %vm379_vm0 = vcmask (!%p238_p2), 1043456   ;;  %vm287_vm1 = vcmask (!%p238_p2), 31744   ;;  %vm289_vm2 = vcmask (!%p238_p2), 25600   ;;  %v3911_v1 = vmov (!%p238_p2), 0.0  }
   0x6   : > { %241 = sbr.rel (%p238_p2) target bundleno = 742 (0x2e6), region = 48  ;;  %3514 = vmatprep.subr.msk.mxu0 (!%p238_p2), %vm379_vm0, %v3175_v0  ;;  %288 = vst.msk [vmem:[#allocation2] sm:$0xff] (!%p238_p2), %vm287_vm1, %v3911_v1  ;;  %291 = vst.msk [vmem:[#allocation2 + $0x10] sm:$0xff] (!%p238_p2), %vm287_vm1, %v3911_v1  ;;  %v344_v2 = vld [vmem:[%s4553_s1] sm:$0xf] (!%p238_p2)  ;;  %p269_p3 = scmp.lt.s32.totalorder (!%p238_p2), %s3166_s25, 1 }
   0x7   : > { %290 = vst.msk [vmem:[#allocation2 + $0x8] sm:$0x3] (!%p238_p2), %vm289_vm2, %v3911_v1  ;;  %292 = vst.msk [vmem:[#allocation2 + $0x18] sm:$0x3] (!%p238_p2), %vm289_vm2, %v3911_v1  ;;  %3515 = vmatpush3.msk.msra.mxu0 (!%p238_p2), %vm379_vm0, %v3175_v0  ;;  %vm318_vm3 = vcmask (!%p238_p2), 31751   ;;  %vm327_vm4 = vcmask (!%p238_p2), 24576  }
   0x8   : > { %293 = vst.msk [vmem:[#allocation2 + $0x20] sm:$0xff] (!%p238_p2), %vm287_vm1, %v3911_v1  ;;  %295 = vst.msk [vmem:[#allocation2 + $0x30] sm:$0xff] (!%p238_p2), %vm287_vm1, %v3911_v1  ;;  %3528 = vmatprep.subr.msk.mxu0 (!%p238_p2), %vm379_vm0, %v344_v2  ;;  %v3194_v14 = vld [vmem:[%s4553_s1 + $0x8] sm:$0xf] (!%p238_p2)  ;;  %v3204_v23 = vld [vmem:[%s4553_s1 + $0xc] sm:$0xf] (!%p238_p2) }
   0x9   : > { %294 = vst.msk [vmem:[#allocation2 + $0x28] sm:$0x3] (!%p238_p2), %vm289_vm2, %v3911_v1  ;;  %296 = vst.msk [vmem:[#allocation2 + $0x38] sm:$0x3] (!%p238_p2), %vm289_vm2, %v3911_v1  ;;  %v3214_v32 = vld [vmem:[%s4553_s1 + $0x10] sm:$0xf] (!%p238_p2) }
   0xa   : > { %297 = vst.msk [vmem:[#allocation2 + $0x40] sm:$0xff] (!%p238_p2), %vm287_vm1, %v3911_v1  ;;  %299 = vst.msk [vmem:[#allocation2 + $0x50] sm:$0xff] (!%p238_p2), %vm287_vm1, %v3911_v1  ;;  %v3224_v38 = vld [vmem:[%s4553_s1 + $0x14] sm:$0xf] (!%p238_p2)  ;;  %v3234_v40 = vld [vmem:[%s4553_s1 + $0x18] sm:$0xf] (!%p238_p2) }
   0xb   : > { %298 = vst.msk [vmem:[#allocation2 + $0x48] sm:$0x3] (!%p238_p2), %vm289_vm2, %v3911_v1  ;;  %300 = vst.msk [vmem:[#allocation2 + $0x58] sm:$0x3] (!%p238_p2), %vm289_vm2, %v3911_v1  ;;  %v3244_v42 = vld [vmem:[%s4553_s1 + $0x1c] sm:$0xf] (!%p238_p2) }
   0xc   : > { %301 = vst.msk [vmem:[#allocation2 + $0x60] sm:$0xff] (!%p238_p2), %vm287_vm1, %v3911_v1  ;;  %303 = vst.msk [vmem:[#allocation2 + $0x70] sm:$0xff] (!%p238_p2), %vm287_vm1, %v3911_v1  ;;  %v3254_v44 = vld [vmem:[%s4553_s1 + $0x20] sm:$0xf] (!%p238_p2)  ;;  %vm1709_vm5 = vcmask (!%p238_p2), 64512   ;;  %vm1711_vm6 = vcmask (!%p238_p2), 58368  }
   0xd   : > { %302 = vst.msk [vmem:[#allocation2 + $0x68] sm:$0x3] %vm289_vm2, %v3911_v1  ;;  %304 = vst.msk [vmem:[#allocation2 + $0x78] sm:$0x3] %vm289_vm2, %v3911_v1  ;;  %s4561_s25 = smov (!%p269_p3, %s3166_s25), 1  ;;  %v336_v20 = vld [vmem:[#allocation2] sm:$0xff] }
   0xe   : > { %305 = vst.msk [vmem:[#allocation2 + $0x80] sm:$0xff] %vm287_vm1, %v3911_v1  ;;  %307 = vst.msk [vmem:[#allocation2 + $0x90] sm:$0xff] %vm287_vm1, %v3911_v1  ;;  %s3350_s30 = sshll.u32 %s4561_s25, 6  ;;  %v345_v6 = vld [vmem:[#allocation2 + $0x1] sm:$0xff]  ;;  %v3264_v51 = vld [vmem:[%s4554_s2] ss:$0 sm:$0xff] }
   0xf   : > { %306 = vst.msk [vmem:[#allocation2 + $0x88] sm:$0x3] %vm289_vm2, %v3911_v1  ;;  %308 = vst.msk [vmem:[#allocation2 + $0x98] sm:$0x3] %vm289_vm2, %v3911_v1  ;;  %s4021_s10 = scalar_lea.vmem %s4552_s0, %s3350_s30  ;;  %3516 = vmatprep.mubr.msk.f32.mxu0 %vm287_vm1, %v345_v6  ;;  %v620_v29 = vld [vmem:[#allocation2 + $0x2] sm:$0xff]  ;;  %vm1740_vm7 = vcmask 64519   ;;  %s4531_s13 = scalar_lea.vmem %s4559_s7, %s3350_s30 }
  0x10   : > { %v279_v3 = vld [vmem:[%s4021_s10] sm:$0xff]  ;;  %v280_v4 = vld [vmem:[%s4021_s10 + $0x8] sm:$0xff]  ;;  %v281_v5 = vld [vmem:[%s4021_s10 + $0x10] sm:$0xff]  ;;  %1715 = vst.msk [vmem:[#allocation3 + $0x20] sm:$0xff] %vm1709_vm5, %v3911_v1  ;;  %vm1749_vm8 = vcmask 57344  }
  0x11   : > { %310 = vst.msk [vmem:[#allocation2 + $0x11] sm:$0xff] %vm287_vm1, %v279_v3  ;;  %311 = vst.msk [vmem:[#allocation2 + $0x21] sm:$0xff] %vm287_vm1, %v280_v4  ;;  %v282_v7 = vld [vmem:[%s4021_s10 + $0x18] sm:$0xff]  ;;  %v283_v8 = vld [vmem:[%s4021_s10 + $0x20] sm:$0xff] }
  0x12   : > { %312 = vst.msk [vmem:[#allocation2 + $0x31] sm:$0xff] %vm287_vm1, %v281_v5  ;;  %313 = vst.msk [vmem:[#allocation2 + $0x41] sm:$0xff] %vm287_vm1, %v282_v7  ;;  %v284_v9 = vld [vmem:[%s4021_s10 + $0x28] sm:$0xff]  ;;  %v285_v10 = vld [vmem:[%s4021_s10 + $0x30] sm:$0xff] }
  0x13   : > { %319 = vst.msk [vmem:[#allocation2 + $0x9] sm:$0x80] %vm318_vm3, %v279_v3  ;;  %320 = vst.msk [vmem:[#allocation2 + $0x19] sm:$0x80] %vm318_vm3, %v280_v4  ;;  %v286_v11 = vld [vmem:[%s4021_s10 + $0x38] sm:$0xff]  ;;  %v3266_v48 = vld [vmem:[%s4556_s4 + $0x8] sm:$0xff] }
  0x14   : > { %321 = vst.msk [vmem:[#allocation2 + $0x29] sm:$0x80] %vm318_vm3, %v281_v5  ;;  %322 = vst.msk [vmem:[#allocation2 + $0x39] sm:$0x80] %vm318_vm3, %v282_v7  ;;  %3640 = vmatprep.subr.mxu1 %v3266_v48  ;;  %v1766_v50 = vld [vmem:[%s4556_s4] sm:$0xff] }
  0x15   : > { %328 = vst.msk [vmem:[#allocation2 + $0x19] sm:$0x1] %vm327_vm4, %v279_v3  ;;  %329 = vst.msk [vmem:[#allocation2 + $0x29] sm:$0x1] %vm327_vm4, %v280_v4  ;;  %v1228_v45 = vld [vmem:[#allocation2 + $0x90] sm:$0xff]  ;;  %3641 = vmatpush3.msra.mxu1 %v3266_v48 }
  0x16   : > { %330 = vst.msk [vmem:[#allocation2 + $0x39] sm:$0x1] %vm327_vm4, %v281_v5  ;;  %331 = vst.msk [vmem:[#allocation2 + $0x49] sm:$0x1] %vm327_vm4, %v282_v7  ;;  %v1378_v46 = vld [vmem:[#allocation2 + $0x91] sm:$0xff]  ;;  %3654 = vmatprep.subr.mxu1 %v1766_v50 }
  0x17   : > { %314 = vst.msk [vmem:[#allocation2 + $0x51] sm:$0xff] %vm287_vm1, %v283_v8  ;;  %315 = vst.msk [vmem:[#allocation2 + $0x61] sm:$0xff] %vm287_vm1, %v284_v9  ;;  %v1528_v47 = vld [vmem:[#allocation2 + $0x92] sm:$0xff]  ;;  %v3265_v53 = vld [vmem:[%s4555_s3] ss:$0 sm:$0xff] }
  0x18   : > { %323 = vst.msk [vmem:[#allocation2 + $0x49] sm:$0x80] %vm318_vm3, %v283_v8  ;;  %324 = vst.msk [vmem:[#allocation2 + $0x59] sm:$0x80] %vm318_vm3, %v284_v9  ;;  %v4056_v12 = vld [vmem:[#allocation2 + $0x11] sm:$0xff]  ;;  %v4058_v13 = vld [vmem:[#allocation2 + $0x21] sm:$0xff] }
  0x19   : > { %332 = vst.msk [vmem:[#allocation2 + $0x59] sm:$0x1] %vm327_vm4, %v283_v8  ;;  %333 = vst.msk [vmem:[#allocation2 + $0x69] sm:$0x1] %vm327_vm4, %v284_v9  ;;  %3517 = vmatmul.mubr.msk.f32.vlgmr.msra.gmra.mrb[0].mxu0 %vm287_vm1, %v4056_v12  ;;  %v4068_v15 = vld [vmem:[#allocation2 + $0x31] sm:$0xff]  ;;  %v4070_v16 = vld [vmem:[#allocation2 + $0x41] sm:$0xff] }
  0x1a   : > { %316 = vst.msk [vmem:[#allocation2 + $0x71] sm:$0xff] %vm287_vm1, %v285_v10  ;;  %317 = vst.msk [vmem:[#allocation2 + $0x81] sm:$0xff] %vm287_vm1, %v286_v11  ;;  %3529 = vmatpush3.msk.msra.mxu0 %vm379_vm0, %v344_v2  ;;  %3519 = vmatprep.mubr.msk.f32.mxu0 %vm287_vm1, %v4058_v13  ;;  %v337_v21 = vld [vmem:[#allocation2 + $0x10] sm:$0xff]  ;;  %v4090_v22 = vld [vmem:[#allocation2 + $0x20] sm:$0xff] }
  0x1b   : > { %325 = vst.msk [vmem:[#allocation2 + $0x69] sm:$0x80] %vm318_vm3, %v285_v10  ;;  %326 = vst.msk [vmem:[#allocation2 + $0x79] sm:$0x80] %vm318_vm3, %v286_v11  ;;  %3542 = vmatprep.subr.msk.mxu0 %vm379_vm0, %v3194_v14  ;;  %v4099_v24 = vld [vmem:[#allocation2 + $0x30] sm:$0xff]  ;;  %v4101_v25 = vld [vmem:[#allocation2 + $0x40] sm:$0xff] }
  0x1c   : > { %334 = vst.msk [vmem:[#allocation2 + $0x79] sm:$0x1] %vm327_vm4, %v285_v10  ;;  %335 = vst.msk [vmem:[#allocation2 + $0x89] sm:$0x1] %vm327_vm4, %v286_v11  ;;  %v621_v30 = vld [vmem:[#allocation2 + $0x12] sm:$0xff]  ;;  %v4121_v31 = vld [vmem:[#allocation2 + $0x22] sm:$0xff] }
  0x1d   : > { %3520 = vmatmul.mubr.msk.f32.gmra.mrb[2].mxu0 %vm287_vm1, %v4068_v15  ;;  %v4130_v33 = vld [vmem:[#allocation2 + $0x32] sm:$0xff]  ;;  %v4132_v34 = vld [vmem:[#allocation2 + $0x42] sm:$0xff]  ;;  %1716 = vst.msk [vmem:[#allocation3 + $0x28] sm:$0x3] %vm1711_vm6, %v3911_v1  ;;  %1712 = vst.msk [vmem:[#allocation3 + $0x8] sm:$0x3] %vm1711_vm6, %v3911_v1 }
  0x1e   : > { %3522 = vmatprep.mubr.msk.f32.mxu0 %vm287_vm1, %v4070_v16  ;;  %v4077_v17 = vld [vmem:[#allocation2 + $0x51] sm:$0xff]  ;;  %v4079_v18 = vld [vmem:[#allocation2 + $0x61] sm:$0xff]  ;;  %1710 = vst.msk [vmem:[#allocation3] sm:$0xff] %vm1709_vm5, %v3911_v1  ;;  %1713 = vst.msk [vmem:[#allocation3 + $0x10] sm:$0xff] %vm1709_vm5, %v3911_v1 }
  0x1f   : > { %v4108_v26 = vld [vmem:[#allocation2 + $0x50] sm:$0xff]  ;;  %v4110_v27 = vld [vmem:[#allocation2 + $0x60] sm:$0xff]  ;;  %1714 = vst.msk [vmem:[#allocation3 + $0x18] sm:$0x3] %vm1711_vm6, %v3911_v1  ;;  %1718 = vst.msk [vmem:[#allocation3 + $0x38] sm:$0x3] %vm1711_vm6, %v3911_v1 }
  0x20   : > { %v4139_v35 = vld [vmem:[#allocation2 + $0x52] sm:$0xff]  ;;  %v4141_v36 = vld [vmem:[#allocation2 + $0x62] sm:$0xff]  ;;  %1717 = vst.msk [vmem:[#allocation3 + $0x30] sm:$0xff] %vm1709_vm5, %v3911_v1  ;;  %1719 = vst.msk [vmem:[#allocation3 + $0x40] sm:$0xff] %vm1709_vm5, %v3911_v1 }
  0x21   : > { %3523 = vmatmul.mubr.msk.f32.gmra.mrb[4].mxu0 %vm287_vm1, %v4077_v17  ;;  %v4085_v19 = vld [vmem:[#allocation2 + $0x71] sm:$0xff]  ;;  %v927_v41 = vld [vmem:[#allocation2 + $0x81] sm:$0xff]  ;;  %1720 = vst.msk [vmem:[#allocation3 + $0x48] sm:$0x3] %vm1711_vm6, %v3911_v1  ;;  %1722 = vst.msk [vmem:[#allocation3 + $0x58] sm:$0x3] %vm1711_vm6, %v3911_v1 }
  0x22   : > { %3525 = vmatprep.mubr.msk.f32.mxu0 %vm287_vm1, %v4079_v18  ;;  %v4116_v28 = vld [vmem:[#allocation2 + $0x70] sm:$0xff]  ;;  %v777_v39 = vld [vmem:[#allocation2 + $0x80] sm:$0xff]  ;;  %1721 = vst.msk [vmem:[#allocation3 + $0x50] sm:$0xff] %vm1709_vm5, %v3911_v1  ;;  %1723 = vst.msk [vmem:[#allocation3 + $0x60] sm:$0xff] %vm1709_vm5, %v3911_v1 }
  0x23   : > { %v4147_v37 = vld [vmem:[#allocation2 + $0x72] sm:$0xff]  ;;  %v1077_v43 = vld [vmem:[#allocation2 + $0x82] sm:$0xff]  ;;  %1724 = vst.msk [vmem:[#allocation3 + $0x68] sm:$0x3] %vm1711_vm6, %v3911_v1  ;;  %1726 = vst.msk [vmem:[#allocation3 + $0x78] sm:$0x3] %vm1711_vm6, %v3911_v1 }
  0x24   : > { %1725 = vst.msk [vmem:[#allocation3 + $0x70] sm:$0xff] %vm1709_vm5, %v3911_v1  ;;  %1727 = vst.msk [vmem:[#allocation3 + $0x80] sm:$0xff] %vm1709_vm5, %v3911_v1 }
  0x25   : > { %3526 = vmatmul.mubr.msk.f32.gmra.mrb[6].mxu0 %vm287_vm1, %v4085_v19  ;;  %1728 = vst.msk [vmem:[#allocation3 + $0x88] sm:$0x3] %vm1711_vm6, %v3911_v1  ;;  %1730 = vst.msk [vmem:[#allocation3 + $0x98] sm:$0x3] %vm1711_vm6, %v3911_v1  ;;  %v1767_v49 = vld [vmem:[#allocation3 + $0x1] sm:$0xff] }
  0x26   : > { %3530 = vmatprep.mubr.msk.f32.mxu0 %vm287_vm1, %v336_v20  ;;  %1729 = vst.msk [vmem:[#allocation3 + $0x90] sm:$0xff] %vm1709_vm5, %v3911_v1  ;;  %3642 = vmatprep.mubr.msk.f32.mxu1 %vm1709_vm5, %v1767_v49  ;;  %v3319_v49 = vld [vmem:[%s4556_s4 + $0x30] sm:$0xff] }
  0x29   : > { %3531 = vmatmul.mubr.msk.f32.vlgmr.msra.gmra.mrb[0].mxu0 %vm287_vm1, %v337_v21 }
  0x2a   : > { %3543 = vmatpush3.msk.msra.mxu0 %vm379_vm0, %v3194_v14  ;;  %3533 = vmatprep.mubr.msk.f32.mxu0 %vm287_vm1, %v4090_v22 }
  0x2b   : > { %3556 = vmatprep.subr.msk.mxu0 %vm379_vm0, %v3204_v23 }
  0x2d   : > { %3534 = vmatmul.mubr.msk.f32.gmra.mrb[2].mxu0 %vm287_vm1, %v4099_v24 }
  0x2e   : > { %3536 = vmatprep.mubr.msk.f32.mxu0 %vm287_vm1, %v4101_v25 }
  0x31   : > { %3537 = vmatmul.mubr.msk.f32.gmra.mrb[4].mxu0 %vm287_vm1, %v4108_v26 }
  0x32   : > { %3539 = vmatprep.mubr.msk.f32.mxu0 %vm287_vm1, %v4110_v27 }
  0x35   : > { %3540 = vmatmul.mubr.msk.f32.gmra.mrb[6].mxu0 %vm287_vm1, %v4116_v28 }
  0x36   : > { %3544 = vmatprep.mubr.msk.f32.mxu0 %vm287_vm1, %v620_v29 }
  0x39   : > { %3545 = vmatmul.mubr.msk.f32.vlgmr.msra.gmra.mrb[0].mxu0 %vm287_vm1, %v621_v30 }
  0x3a   : > { %3557 = vmatpush3.msk.msra.mxu0 %vm379_vm0, %v3204_v23  ;;  %3547 = vmatprep.mubr.msk.f32.mxu0 %vm287_vm1, %v4121_v31 }
  0x3b   : > { %3570 = vmatprep.subr.msk.mxu0 %vm379_vm0, %v3214_v32 }
  0x3d   : > { %3548 = vmatmul.mubr.msk.f32.gmra.mrb[2].mxu0 %vm287_vm1, %v4130_v33 }
  0x3e   : > { %3550 = vmatprep.mubr.msk.f32.mxu0 %vm287_vm1, %v4132_v34 }
  0x41   : > { %3551 = vmatmul.mubr.msk.f32.gmra.mrb[4].mxu0 %vm287_vm1, %v4139_v35 }
  0x42   : > { %3553 = vmatprep.mubr.msk.f32.mxu0 %vm287_vm1, %v4141_v36 }
  0x45   : > { %3554 = vmatmul.mubr.msk.f32.gmra.mrb[6].mxu0 %vm287_vm1, %v4147_v37 }
  0x46   : > { %3558 = vmatprep.mubr.msk.f32.mxu0 %vm287_vm1, %v337_v21 }
  0x49   : > { %3559 = vmatmul.mubr.msk.f32.vlgmr.msra.gmra.mrb[0].mxu0 %vm287_vm1, %v4090_v22 }
  0x4a   : > { %3571 = vmatpush3.msk.msra.mxu0 %vm379_vm0, %v3214_v32  ;;  %3561 = vmatprep.mubr.msk.f32.mxu0 %vm287_vm1, %v4099_v24 }
  0x4b   : > { %3584 = vmatprep.subr.msk.mxu0 %vm379_vm0, %v3224_v38 }
  0x4d   : > { %3562 = vmatmul.mubr.msk.f32.gmra.mrb[2].mxu0 %vm287_vm1, %v4101_v25 }
  0x4e   : > { %3564 = vmatprep.mubr.msk.f32.mxu0 %vm287_vm1, %v4108_v26 }
  0x51   : > { %3565 = vmatmul.mubr.msk.f32.gmra.mrb[4].mxu0 %vm287_vm1, %v4110_v27 }
  0x52   : > { %3567 = vmatprep.mubr.msk.f32.mxu0 %vm287_vm1, %v4116_v28 }
  0x55   : > { %3568 = vmatmul.mubr.msk.f32.gmra.mrb[6].mxu0 %vm287_vm1, %v777_v39 }
  0x56   : > { %3572 = vmatprep.mubr.msk.f32.mxu0 %vm287_vm1, %v4056_v12 }
  0x59   : > { %3573 = vmatmul.mubr.msk.f32.vlgmr.msra.gmra.mrb[0].mxu0 %vm287_vm1, %v4058_v13 }
  0x5a   : > { %3585 = vmatpush3.msk.msra.mxu0 %vm379_vm0, %v3224_v38  ;;  %3575 = vmatprep.mubr.msk.f32.mxu0 %vm287_vm1, %v4068_v15 }
  0x5b   : > { %3598 = vmatprep.subr.msk.mxu0 %vm379_vm0, %v3234_v40 }
  0x5d   : > { %3576 = vmatmul.mubr.msk.f32.gmra.mrb[2].mxu0 %vm287_vm1, %v4070_v16 }
  0x5e   : > { %3578 = vmatprep.mubr.msk.f32.mxu0 %vm287_vm1, %v4077_v17 }
  0x61   : > { %3579 = vmatmul.mubr.msk.f32.gmra.mrb[4].mxu0 %vm287_vm1, %v4079_v18 }
  0x62   : > { %3581 = vmatprep.mubr.msk.f32.mxu0 %vm287_vm1, %v4085_v19 }
  0x65   : > { %3582 = vmatmul.mubr.msk.f32.gmra.mrb[6].mxu0 %vm287_vm1, %v927_v41 }
  0x66   : > { %3586 = vmatprep.mubr.msk.f32.mxu0 %vm287_vm1, %v621_v30 }
  0x69   : > { %3587 = vmatmul.mubr.msk.f32.vlgmr.msra.gmra.mrb[0].mxu0 %vm287_vm1, %v4121_v31 }
  0x6a   : > { %3599 = vmatpush3.msk.msra.mxu0 %vm379_vm0, %v3234_v40  ;;  %3589 = vmatprep.mubr.msk.f32.mxu0 %vm287_vm1, %v4130_v33  ;;  %v3301_v40 = vld [vmem:[%s4556_s4 + $0x20] sm:$0xff] }
  0x6b   : > { %3612 = vmatprep.subr.msk.mxu0 %vm379_vm0, %v3244_v42 }
  0x6d   : > { %3590 = vmatmul.mubr.msk.f32.gmra.mrb[2].mxu0 %vm287_vm1, %v4132_v34 }
  0x6e   : > { %3592 = vmatprep.mubr.msk.f32.mxu0 %vm287_vm1, %v4139_v35 }
  0x71   : > { %3593 = vmatmul.mubr.msk.f32.gmra.mrb[4].mxu0 %vm287_vm1, %v4141_v36 }
  0x72   : > { %3595 = vmatprep.mubr.msk.f32.mxu0 %vm287_vm1, %v4147_v37 }
  0x75   : > { %3596 = vmatmul.mubr.msk.f32.gmra.mrb[6].mxu0 %vm287_vm1, %v1077_v43 }
  0x76   : > { %3600 = vmatprep.mubr.msk.f32.mxu0 %vm287_vm1, %v4090_v22 }
  0x79   : > { %3601 = vmatmul.mubr.msk.f32.vlgmr.msra.gmra.mrb[0].mxu0 %vm287_vm1, %v4099_v24 }
  0x7a   : > { %3613 = vmatpush3.msk.msra.mxu0 %vm379_vm0, %v3244_v42  ;;  %3603 = vmatprep.mubr.msk.f32.mxu0 %vm287_vm1, %v4101_v25 }
  0x7b   : > { %3626 = vmatprep.subr.msk.mxu0 %vm379_vm0, %v3254_v44 }
  0x7d   : > { %3604 = vmatmul.mubr.msk.f32.gmra.mrb[2].mxu0 %vm287_vm1, %v4108_v26 }
  0x7e   : > { %3606 = vmatprep.mubr.msk.f32.mxu0 %vm287_vm1, %v4110_v27 }
  0x81   : > { %3607 = vmatmul.mubr.msk.f32.gmra.mrb[4].mxu0 %vm287_vm1, %v4116_v28  ;;  %v1758_v28 = vld [vmem:[#allocation3] sm:$0xff] }
  0x82   : > { %3609 = vmatprep.mubr.msk.f32.mxu0 %vm287_vm1, %v777_v39 }
  0x85   : > { %3610 = vmatmul.mubr.msk.f32.gmra.mrb[6].mxu0 %vm287_vm1, %v1228_v45 }
  0x86   : > { %3614 = vmatprep.mubr.msk.f32.mxu0 %vm287_vm1, %v4058_v13 }
  0x89   : > { %3615 = vmatmul.mubr.msk.f32.vlgmr.msra.gmra.mrb[0].mxu0 %vm287_vm1, %v4068_v15 }
  0x8a   : > { %3627 = vmatpush3.msk.msra.mxu0 %vm379_vm0, %v3254_v44  ;;  %3617 = vmatprep.mubr.msk.f32.mxu0 %vm287_vm1, %v4070_v16 }
  0x8d   : > { %3618 = vmatmul.mubr.msk.f32.gmra.mrb[2].mxu0 %vm287_vm1, %v4077_v17 }
  0x8e   : > { %3620 = vmatprep.mubr.msk.f32.mxu0 %vm287_vm1, %v4079_v18 }
  0x91   : > { %3621 = vmatmul.mubr.msk.f32.gmra.mrb[4].mxu0 %vm287_vm1, %v4085_v19  ;;  %v3283_v19 = vld [vmem:[%s4556_s4 + $0x10] sm:$0xff] }
  0x92   : > { %3623 = vmatprep.mubr.msk.f32.mxu0 %vm287_vm1, %v927_v41 }
  0x95   : > { %3624 = vmatmul.mubr.msk.f32.gmra.mrb[6].mxu0 %vm287_vm1, %v1378_v46 }
  0x96   : > { %3628 = vmatprep.mubr.msk.f32.mxu0 %vm287_vm1, %v4121_v31  ;;  %v3292_v31 = vld [vmem:[%s4556_s4 + $0x18] sm:$0xff] }
  0x99   : > { %3629 = vmatmul.mubr.msk.f32.vlgmr.msra.gmra.mrb[0].mxu0 %vm287_vm1, %v4130_v33 }
  0x9a   : > { %3631 = vmatprep.mubr.msk.f32.mxu0 %vm287_vm1, %v4132_v34 }
  0x9d   : > { %3632 = vmatmul.mubr.msk.f32.gmra.mrb[2].mxu0 %vm287_vm1, %v4139_v35 }
  0x9e   : > { %3634 = vmatprep.mubr.msk.f32.mxu0 %vm287_vm1, %v4141_v36 }
  0xa1   : > { %3635 = vmatmul.mubr.msk.f32.gmra.mrb[4].mxu0 %vm287_vm1, %v4147_v37  ;;  %v2035_v37 = vld [vmem:[#allocation3 + $0x2] sm:$0xff] }
  0xa2   : > { %3637 = vmatprep.mubr.msk.f32.mxu0 %vm287_vm1, %v1077_v43 }
  0xa5   : > { %3638 = vmatmul.mubr.msk.f32.gmra.mrb[6].mxu0 %vm287_vm1, %v1528_v47  ;;  %v3310_v47 = vld [vmem:[%s4556_s4 + $0x28] sm:$0xff] }
 0x16c   : > { %v3630_v52 = vpop.f32.mrb[0].mxu0 }
 0x16d   : > { %v1679_v54 = vmul.f32 %v3630_v52, %v3264_v51  ;;  %v1624_v55 = vpop.f32.mrb[1].mxu0 }
 0x16e   : > { %v1678_v56 = vmul.f32 %v3264_v51, %v1624_v55  ;;  %v2778_v55 = vld [vmem:[#allocation3 + $0x91] sm:$0xff] }
 0x16f   : > { %v1694_v57 = vadd.f32 %v3265_v53, %v1679_v54  ;;  %v2631_v54 = vld [vmem:[#allocation3 + $0x90] sm:$0xff] }
 0x170   : > { %v1693_v58 = vadd.f32 %v3265_v53, %v1678_v56  ;;  %v3633_v59 = vpop.f32.mrb[2].mxu0  ;;  %v2925_v56 = vld [vmem:[#allocation3 + $0x92] sm:$0xff] }
 0x171   : > { %v1702_v60 = vmax.f32 %v1694_v57, 0.0  ;;  %v1681_v61 = vmul.f32 %v3633_v59, %v3264_v51  ;;  %v1634_v62 = vpop.f32.mrb[3].mxu0  ;;  %v3346_v57 = vld [vmem:[%s4557_s5] ss:$0 sm:$0xff] }
 0x172   : > { %v1701_v63 = vmax.f32 %v1693_v58, 0.0  ;;  %v1680_v0 = vmul.f32 %v3264_v51, %v1634_v62  ;;  %v3347_v59 = vld [vmem:[%s4558_s6] ss:$0 sm:$0xff] }
 0x173   : > { %1733 = vst.msk [vmem:[#allocation3 + $0x21] sm:$0xff] %vm1709_vm5, %v1702_v60  ;;  %v1696_v1 = vadd.f32 %v3265_v53, %v1681_v61 }
 0x174   : > { %1742 = vst.msk [vmem:[#allocation3 + $0x19] sm:$0x80] %vm1740_vm7, %v1702_v60  ;;  %1741 = vst.msk [vmem:[#allocation3 + $0x9] sm:$0x80] %vm1740_vm7, %v1701_v63  ;;  %v1695_v2 = vadd.f32 %v3265_v53, %v1680_v0  ;;  %v3636_v3 = vpop.f32.mrb[4].mxu0 }
 0x175   : > { %1751 = vst.msk [vmem:[#allocation3 + $0x29] sm:$0x1] %vm1749_vm8, %v1702_v60  ;;  %1750 = vst.msk [vmem:[#allocation3 + $0x19] sm:$0x1] %vm1749_vm8, %v1701_v63  ;;  %v1704_v4 = vmax.f32 %v1696_v1, 0.0  ;;  %v1683_v5 = vmul.f32 %v3636_v3, %v3264_v51  ;;  %v1644_v6 = vpop.f32.mrb[5].mxu0 }
 0x176   : > { %1732 = vst.msk [vmem:[#allocation3 + $0x11] sm:$0xff] %vm1709_vm5, %v1701_v63  ;;  %v1703_v7 = vmax.f32 %v1695_v2, 0.0  ;;  %v1682_v8 = vmul.f32 %v3264_v51, %v1644_v6 }
 0x177   : > { %1735 = vst.msk [vmem:[#allocation3 + $0x41] sm:$0xff] %vm1709_vm5, %v1704_v4  ;;  %v1698_v9 = vadd.f32 %v3265_v53, %v1683_v5 }
 0x178   : > { %1744 = vst.msk [vmem:[#allocation3 + $0x39] sm:$0x80] %vm1740_vm7, %v1704_v4  ;;  %1743 = vst.msk [vmem:[#allocation3 + $0x29] sm:$0x80] %vm1740_vm7, %v1703_v7  ;;  %v1697_v10 = vadd.f32 %v3265_v53, %v1682_v8  ;;  %v3639_v11 = vpop.f32.mrb[6].mxu0 }
 0x179   : > { %1753 = vst.msk [vmem:[#allocation3 + $0x49] sm:$0x1] %vm1749_vm8, %v1704_v4  ;;  %1752 = vst.msk [vmem:[#allocation3 + $0x39] sm:$0x1] %vm1749_vm8, %v1703_v7  ;;  %v1706_v12 = vmax.f32 %v1698_v9, 0.0  ;;  %v1685_v13 = vmul.f32 %v3639_v11, %v3264_v51  ;;  %v1654_v14 = vpop.f32.mrb[7].mxu0 }
 0x17a   : > { %1734 = vst.msk [vmem:[#allocation3 + $0x31] sm:$0xff] %vm1709_vm5, %v1703_v7  ;;  %v1705_v15 = vmax.f32 %v1697_v10, 0.0  ;;  %v1684_v16 = vmul.f32 %v3264_v51, %v1654_v14  ;;  %v4335_v21 = vld [vmem:[#allocation3 + $0x21] sm:$0xff]  ;;  %v3328_v51 = vld [vmem:[%s4556_s4 + $0x38] sm:$0xff] }
 0x17b   : > { %1737 = vst.msk [vmem:[#allocation3 + $0x61] sm:$0xff] %vm1709_vm5, %v1706_v12  ;;  %v1700_v17 = vadd.f32 %v3265_v53, %v1685_v13  ;;  %v4370_v32 = vld [vmem:[#allocation3 + $0x20] sm:$0xff] }
 0x17c   : > { %1746 = vst.msk [vmem:[#allocation3 + $0x59] sm:$0x80] %vm1740_vm7, %v1706_v12  ;;  %1745 = vst.msk [vmem:[#allocation3 + $0x49] sm:$0x80] %vm1740_vm7, %v1705_v15  ;;  %v1699_v20 = vadd.f32 %v3265_v53, %v1684_v16  ;;  %v4399_v41 = vld [vmem:[#allocation3 + $0x22] sm:$0xff] }
 0x17d   : > { %1755 = vst.msk [vmem:[#allocation3 + $0x69] sm:$0x1] %vm1749_vm8, %v1706_v12  ;;  %v4325_v18 = vld [vmem:[#allocation3 + $0x11] sm:$0xff]  ;;  %1754 = vst.msk [vmem:[#allocation3 + $0x59] sm:$0x1] %vm1749_vm8, %v1705_v15  ;;  %v1708_v22 = vmax.f32 %v1700_v17, 0.0 }
 0x17e   : > { %1736 = vst.msk [vmem:[#allocation3 + $0x51] sm:$0xff] %vm1709_vm5, %v1705_v15  ;;  %3643 = vmatmul.mubr.msk.f32.vlgmr.msra.gmra.mrb[0].mxu1 %vm1709_vm5, %v4325_v18  ;;  %v1707_v23 = vmax.f32 %v1699_v20, 0.0  ;;  %v4349_v25 = vld [vmem:[#allocation3 + $0x41] sm:$0xff]  ;;  %v1759_v30 = vld [vmem:[#allocation3 + $0x10] sm:$0xff] }
 0x17f   : > { %3655 = vmatpush3.msra.mxu1 %v1766_v50  ;;  %3645 = vmatprep.mubr.msk.f32.mxu1 %vm1709_vm5, %v4335_v21  ;;  %1739 = vst.msk [vmem:[#allocation3 + $0x81] sm:$0xff] %vm1709_vm5, %v1708_v22  ;;  %v4378_v34 = vld [vmem:[#allocation3 + $0x40] sm:$0xff]  ;;  %v2036_v39 = vld [vmem:[#allocation3 + $0x12] sm:$0xff] }
 0x180   : > { %3668 = vmatprep.subr.mxu1 %v3283_v19  ;;  %1748 = vst.msk [vmem:[#allocation3 + $0x79] sm:$0x80] %vm1740_vm7, %v1708_v22  ;;  %1747 = vst.msk [vmem:[#allocation3 + $0x69] sm:$0x80] %vm1740_vm7, %v1707_v23  ;;  %v4407_v43 = vld [vmem:[#allocation3 + $0x42] sm:$0xff] }
 0x181   : > { %1757 = vst.msk [vmem:[#allocation3 + $0x89] sm:$0x1] %vm1749_vm8, %v1708_v22  ;;  %v4342_v24 = vld [vmem:[#allocation3 + $0x31] sm:$0xff]  ;;  %1756 = vst.msk [vmem:[#allocation3 + $0x79] sm:$0x1] %vm1749_vm8, %v1707_v23  ;;  %v3337_v53 = vld [vmem:[%s4556_s4 + $0x40] sm:$0xff] }
 0x182   : > { %1738 = vst.msk [vmem:[#allocation3 + $0x71] sm:$0xff] %vm1709_vm5, %v1707_v23  ;;  %3646 = vmatmul.mubr.msk.f32.gmra.mrb[2].mxu1 %vm1709_vm5, %v4342_v24  ;;  %v4357_v27 = vld [vmem:[#allocation3 + $0x61] sm:$0xff]  ;;  %v4374_v33 = vld [vmem:[#allocation3 + $0x30] sm:$0xff] }
 0x183   : > { %3648 = vmatprep.mubr.msk.f32.mxu1 %vm1709_vm5, %v4349_v25  ;;  %v4386_v36 = vld [vmem:[#allocation3 + $0x60] sm:$0xff]  ;;  %v4403_v42 = vld [vmem:[#allocation3 + $0x32] sm:$0xff] }
 0x184   : > { %v4415_v45 = vld [vmem:[#allocation3 + $0x62] sm:$0xff] }
 0x185   : > { %v4353_v26 = vld [vmem:[#allocation3 + $0x51] sm:$0xff] }
 0x186   : > { %3649 = vmatmul.mubr.msk.f32.gmra.mrb[4].mxu1 %vm1709_vm5, %v4353_v26  ;;  %v4382_v35 = vld [vmem:[#allocation3 + $0x50] sm:$0xff]  ;;  %v2336_v50 = vld [vmem:[#allocation3 + $0x81] sm:$0xff] }
 0x187   : > { %3651 = vmatprep.mubr.msk.f32.mxu1 %vm1709_vm5, %v4357_v27  ;;  %v4411_v44 = vld [vmem:[#allocation3 + $0x52] sm:$0xff]  ;;  %v2189_v48 = vld [vmem:[#allocation3 + $0x80] sm:$0xff] }
 0x188   : > { %v2483_v52 = vld [vmem:[#allocation3 + $0x82] sm:$0xff] }
 0x189   : > { %v4361_v29 = vld [vmem:[#allocation3 + $0x71] sm:$0xff] }
 0x18a   : > { %3652 = vmatmul.mubr.msk.f32.gmra.mrb[6].mxu1 %vm1709_vm5, %v4361_v29  ;;  %v4390_v38 = vld [vmem:[#allocation3 + $0x70] sm:$0xff] }
 0x18b   : > { %3656 = vmatprep.mubr.msk.f32.mxu1 %vm1709_vm5, %v1758_v28  ;;  %v4419_v46 = vld [vmem:[#allocation3 + $0x72] sm:$0xff] }
 0x18e   : > { %3657 = vmatmul.mubr.msk.f32.vlgmr.msra.gmra.mrb[0].mxu1 %vm1709_vm5, %v1759_v30 }
 0x18f   : > { %3669 = vmatpush3.msra.mxu1 %v3283_v19  ;;  %3659 = vmatprep.mubr.msk.f32.mxu1 %vm1709_vm5, %v4370_v32 }
 0x190   : > { %3682 = vmatprep.subr.mxu1 %v3292_v31 }
 0x192   : > { %3660 = vmatmul.mubr.msk.f32.gmra.mrb[2].mxu1 %vm1709_vm5, %v4374_v33 }
 0x193   : > { %3662 = vmatprep.mubr.msk.f32.mxu1 %vm1709_vm5, %v4378_v34 }
 0x196   : > { %3663 = vmatmul.mubr.msk.f32.gmra.mrb[4].mxu1 %vm1709_vm5, %v4382_v35 }
 0x197   : > { %3665 = vmatprep.mubr.msk.f32.mxu1 %vm1709_vm5, %v4386_v36 }
 0x19a   : > { %3666 = vmatmul.mubr.msk.f32.gmra.mrb[6].mxu1 %vm1709_vm5, %v4390_v38 }
 0x19b   : > { %3670 = vmatprep.mubr.msk.f32.mxu1 %vm1709_vm5, %v2035_v37 }
 0x19e   : > { %3671 = vmatmul.mubr.msk.f32.vlgmr.msra.gmra.mrb[0].mxu1 %vm1709_vm5, %v2036_v39 }
 0x19f   : > { %3683 = vmatpush3.msra.mxu1 %v3292_v31  ;;  %3673 = vmatprep.mubr.msk.f32.mxu1 %vm1709_vm5, %v4399_v41 }
 0x1a0   : > { %3696 = vmatprep.subr.mxu1 %v3301_v40 }
 0x1a2   : > { %3674 = vmatmul.mubr.msk.f32.gmra.mrb[2].mxu1 %vm1709_vm5, %v4403_v42 }
 0x1a3   : > { %3676 = vmatprep.mubr.msk.f32.mxu1 %vm1709_vm5, %v4407_v43 }
 0x1a6   : > { %3677 = vmatmul.mubr.msk.f32.gmra.mrb[4].mxu1 %vm1709_vm5, %v4411_v44 }
 0x1a7   : > { %3679 = vmatprep.mubr.msk.f32.mxu1 %vm1709_vm5, %v4415_v45 }
 0x1aa   : > { %3680 = vmatmul.mubr.msk.f32.gmra.mrb[6].mxu1 %vm1709_vm5, %v4419_v46 }
 0x1ab   : > { %3684 = vmatprep.mubr.msk.f32.mxu1 %vm1709_vm5, %v1759_v30 }
 0x1ae   : > { %3685 = vmatmul.mubr.msk.f32.vlgmr.msra.gmra.mrb[0].mxu1 %vm1709_vm5, %v4370_v32 }
 0x1af   : > { %3697 = vmatpush3.msra.mxu1 %v3301_v40  ;;  %3687 = vmatprep.mubr.msk.f32.mxu1 %vm1709_vm5, %v4374_v33 }
 0x1b0   : > { %3710 = vmatprep.subr.mxu1 %v3310_v47 }
 0x1b2   : > { %3688 = vmatmul.mubr.msk.f32.gmra.mrb[2].mxu1 %vm1709_vm5, %v4378_v34 }
 0x1b3   : > { %3690 = vmatprep.mubr.msk.f32.mxu1 %vm1709_vm5, %v4382_v35 }
 0x1b6   : > { %3691 = vmatmul.mubr.msk.f32.gmra.mrb[4].mxu1 %vm1709_vm5, %v4386_v36 }
 0x1b7   : > { %3693 = vmatprep.mubr.msk.f32.mxu1 %vm1709_vm5, %v4390_v38 }
 0x1ba   : > { %3694 = vmatmul.mubr.msk.f32.gmra.mrb[6].mxu1 %vm1709_vm5, %v2189_v48 }
 0x1bb   : > { %3698 = vmatprep.mubr.msk.f32.mxu1 %vm1709_vm5, %v4325_v18 }
 0x1be   : > { %3699 = vmatmul.mubr.msk.f32.vlgmr.msra.gmra.mrb[0].mxu1 %vm1709_vm5, %v4335_v21 }
 0x1bf   : > { %3711 = vmatpush3.msra.mxu1 %v3310_v47  ;;  %3701 = vmatprep.mubr.msk.f32.mxu1 %vm1709_vm5, %v4342_v24 }
 0x1c0   : > { %3724 = vmatprep.subr.mxu1 %v3319_v49 }
 0x1c2   : > { %3702 = vmatmul.mubr.msk.f32.gmra.mrb[2].mxu1 %vm1709_vm5, %v4349_v25 }
 0x1c3   : > { %3704 = vmatprep.mubr.msk.f32.mxu1 %vm1709_vm5, %v4353_v26 }
 0x1c6   : > { %3705 = vmatmul.mubr.msk.f32.gmra.mrb[4].mxu1 %vm1709_vm5, %v4357_v27 }
 0x1c7   : > { %3707 = vmatprep.mubr.msk.f32.mxu1 %vm1709_vm5, %v4361_v29 }
 0x1ca   : > { %3708 = vmatmul.mubr.msk.f32.gmra.mrb[6].mxu1 %vm1709_vm5, %v2336_v50 }
 0x1cb   : > { %3712 = vmatprep.mubr.msk.f32.mxu1 %vm1709_vm5, %v2036_v39 }
 0x1ce   : > { %3713 = vmatmul.mubr.msk.f32.vlgmr.msra.gmra.mrb[0].mxu1 %vm1709_vm5, %v4399_v41 }
 0x1cf   : > { %3725 = vmatpush3.msra.mxu1 %v3319_v49  ;;  %3715 = vmatprep.mubr.msk.f32.mxu1 %vm1709_vm5, %v4403_v42 }
 0x1d0   : > { %3738 = vmatprep.subr.mxu1 %v3328_v51 }
 0x1d2   : > { %3716 = vmatmul.mubr.msk.f32.gmra.mrb[2].mxu1 %vm1709_vm5, %v4407_v43 }
 0x1d3   : > { %3718 = vmatprep.mubr.msk.f32.mxu1 %vm1709_vm5, %v4411_v44 }
 0x1d6   : > { %3719 = vmatmul.mubr.msk.f32.gmra.mrb[4].mxu1 %vm1709_vm5, %v4415_v45 }
 0x1d7   : > { %3721 = vmatprep.mubr.msk.f32.mxu1 %vm1709_vm5, %v4419_v46 }
 0x1da   : > { %3722 = vmatmul.mubr.msk.f32.gmra.mrb[6].mxu1 %vm1709_vm5, %v2483_v52 }
 0x1db   : > { %3726 = vmatprep.mubr.msk.f32.mxu1 %vm1709_vm5, %v4370_v32 }
 0x1de   : > { %3727 = vmatmul.mubr.msk.f32.vlgmr.msra.gmra.mrb[0].mxu1 %vm1709_vm5, %v4374_v33 }
 0x1df   : > { %3739 = vmatpush3.msra.mxu1 %v3328_v51  ;;  %3729 = vmatprep.mubr.msk.f32.mxu1 %vm1709_vm5, %v4378_v34 }
 0x1e0   : > { %3752 = vmatprep.subr.mxu1 %v3337_v53 }
 0x1e2   : > { %3730 = vmatmul.mubr.msk.f32.gmra.mrb[2].mxu1 %vm1709_vm5, %v4382_v35 }
 0x1e3   : > { %3732 = vmatprep.mubr.msk.f32.mxu1 %vm1709_vm5, %v4386_v36 }
 0x1e6   : > { %3733 = vmatmul.mubr.msk.f32.gmra.mrb[4].mxu1 %vm1709_vm5, %v4390_v38 }
 0x1e7   : > { %3735 = vmatprep.mubr.msk.f32.mxu1 %vm1709_vm5, %v2189_v48 }
 0x1ea   : > { %3736 = vmatmul.mubr.msk.f32.gmra.mrb[6].mxu1 %vm1709_vm5, %v2631_v54 }
 0x1eb   : > { %3740 = vmatprep.mubr.msk.f32.mxu1 %vm1709_vm5, %v4335_v21 }
 0x1ee   : > { %3741 = vmatmul.mubr.msk.f32.vlgmr.msra.gmra.mrb[0].mxu1 %vm1709_vm5, %v4342_v24 }
 0x1ef   : > { %3753 = vmatpush3.msra.mxu1 %v3337_v53  ;;  %3743 = vmatprep.mubr.msk.f32.mxu1 %vm1709_vm5, %v4349_v25 }
 0x1f2   : > { %3744 = vmatmul.mubr.msk.f32.gmra.mrb[2].mxu1 %vm1709_vm5, %v4353_v26 }
 0x1f3   : > { %3746 = vmatprep.mubr.msk.f32.mxu1 %vm1709_vm5, %v4357_v27 }
 0x1f6   : > { %3747 = vmatmul.mubr.msk.f32.gmra.mrb[4].mxu1 %vm1709_vm5, %v4361_v29 }
 0x1f7   : > { %3749 = vmatprep.mubr.msk.f32.mxu1 %vm1709_vm5, %v2336_v50 }
 0x1fa   : > { %3750 = vmatmul.mubr.msk.f32.gmra.mrb[6].mxu1 %vm1709_vm5, %v2778_v55 }
 0x1fb   : > { %3754 = vmatprep.mubr.msk.f32.mxu1 %vm1709_vm5, %v4399_v41 }
 0x1fe   : > { %3755 = vmatmul.mubr.msk.f32.vlgmr.msra.gmra.mrb[0].mxu1 %vm1709_vm5, %v4403_v42 }
 0x1ff   : > { %3757 = vmatprep.mubr.msk.f32.mxu1 %vm1709_vm5, %v4407_v43 }
 0x202   : > { %3758 = vmatmul.mubr.msk.f32.gmra.mrb[2].mxu1 %vm1709_vm5, %v4411_v44 }
 0x203   : > { %3760 = vmatprep.mubr.msk.f32.mxu1 %vm1709_vm5, %v4415_v45 }
 0x206   : > { %3761 = vmatmul.mubr.msk.f32.gmra.mrb[4].mxu1 %vm1709_vm5, %v4419_v46 }
 0x207   : > { %3763 = vmatprep.mubr.msk.f32.mxu1 %vm1709_vm5, %v2483_v52 }
 0x20a   : > { %3764 = vmatmul.mubr.msk.f32.gmra.mrb[6].mxu1 %vm1709_vm5, %v2925_v56 }
 0x2d1   : > { %v3756_v58 = vpop.f32.mrb[0].mxu1 }
 0x2d2   : > { %v3073_v60 = vmul.f32 %v3756_v58, %v3346_v57  ;;  %v3018_v61 = vpop.f32.mrb[1].mxu1 }
 0x2d3   : > { %v3072_v62 = vmul.f32 %v3346_v57, %v3018_v61 }
 0x2d4   : > { %v3088_v63 = vadd.f32 %v3347_v59, %v3073_v60 }
 0x2d5   : > { %v3087_v0 = vadd.f32 %v3347_v59, %v3072_v62  ;;  %v3759_v1 = vpop.f32.mrb[2].mxu1 }
 0x2d6   : > { %v3096_v2 = vmax.f32 %v3088_v63, 0.0  ;;  %v3075_v3 = vmul.f32 %v3759_v1, %v3346_v57  ;;  %v3028_v4 = vpop.f32.mrb[3].mxu1 }
 0x2d7   : > { %v3095_v5 = vmax.f32 %v3087_v0, 0.0  ;;  %v3074_v6 = vmul.f32 %v3346_v57, %v3028_v4 }
 0x2d8   : > { %3104 = vst.msk [vmem:[%s4531_s13 + $0x8] sm:$0xff] %vm1709_vm5, %v3096_v2  ;;  %v3090_v7 = vadd.f32 %v3347_v59, %v3075_v3 }
 0x2d9   : > { %3103 = vst.msk [vmem:[%s4531_s13] sm:$0xff] %vm1709_vm5, %v3095_v5  ;;  %v3089_v8 = vadd.f32 %v3347_v59, %v3074_v6  ;;  %v3762_v9 = vpop.f32.mrb[4].mxu1 }
 0x2da   : > { %v3098_v10 = vmax.f32 %v3090_v7, 0.0  ;;  %v3077_v11 = vmul.f32 %v3762_v9, %v3346_v57  ;;  %v3038_v12 = vpop.f32.mrb[5].mxu1 }
 0x2db   : > { %v3097_v13 = vmax.f32 %v3089_v8, 0.0  ;;  %v3076_v14 = vmul.f32 %v3346_v57, %v3038_v12 }
 0x2dc   : > { %3106 = vst.msk [vmem:[%s4531_s13 + $0x18] sm:$0xff] %vm1709_vm5, %v3098_v10  ;;  %v3092_v15 = vadd.f32 %v3347_v59, %v3077_v11 }
 0x2dd   : > { %3105 = vst.msk [vmem:[%s4531_s13 + $0x10] sm:$0xff] %vm1709_vm5, %v3097_v13  ;;  %v3091_v16 = vadd.f32 %v3347_v59, %v3076_v14  ;;  %v3765_v17 = vpop.f32.mrb[6].mxu1 }
 0x2de   : > { %v3100_v18 = vmax.f32 %v3092_v15, 0.0  ;;  %v3079_v19 = vmul.f32 %v3765_v17, %v3346_v57  ;;  %v3048_v20 = vpop.f32.mrb[7].mxu1 }
 0x2df   : > { %v3099_v21 = vmax.f32 %v3091_v16, 0.0  ;;  %v3078_v22 = vmul.f32 %v3346_v57, %v3048_v20 }
 0x2e0   : > { %3108 = vst.msk [vmem:[%s4531_s13 + $0x28] sm:$0xff] %vm1709_vm5, %v3100_v18  ;;  %v3094_v23 = vadd.f32 %v3347_v59, %v3079_v19 }
 0x2e1   : > { %3107 = vst.msk [vmem:[%s4531_s13 + $0x20] sm:$0xff] %vm1709_vm5, %v3099_v21  ;;  %v3093_v24 = vadd.f32 %v3347_v59, %v3078_v22 }
 0x2e2   : > { %v3102_v25 = vmax.f32 %v3094_v23, 0.0 }
 0x2e3   : > { %v3101_v26 = vmax.f32 %v3093_v24, 0.0 }
 0x2e4   : > { %3110 = vst.msk [vmem:[%s4531_s13 + $0x38] sm:$0xff] %vm1709_vm5, %v3102_v25 }
 0x2e5   : > { %3109 = vst.msk [vmem:[%s4531_s13 + $0x30] sm:$0xff] %vm1709_vm5, %v3101_v26 }
 0x2e6 PF: > { %s17_s24 = sadd.s32 1, %s3909_s24  }
 0x2e7   : > { %p14_p4 = scmp.ge.s32.totalorder %s17_s24, 4  }
 0x2e9   :  { %16 = sbr.rel (!%p14_p4) target bundleno = 1 (0x1), region = 98 }

</bundles_post_ra>
